<compile_context>
chip_gen: v7x
topology: tpu7x:2x2x1
jax: 0.10.0
libtpu: 0.0.40
codegen_flags: <defaults>
</compile_context>

<pallas_src>
import math
import functools

import jax
import jax.numpy as jnp
from jax import lax
from jax.experimental import pallas as pl
from jax.experimental.pallas import tpu as pltpu


# ----------------------------------------------------------------------------
# Wave coordinate features (eval mode: xOffset = yOffset = 0)
# ----------------------------------------------------------------------------
NUM_CH_X = 5
NUM_CH_Y = 4
MIN_CYCLE = 16
MAX_CYCLE_X = 1000
MAX_CYCLE_Y = 700
CYCLE_STEP_X = (MAX_CYCLE_X - MIN_CYCLE) / (NUM_CH_X - 1) ** 2
CYCLE_STEP_Y = (MAX_CYCLE_Y - MIN_CYCLE) / (NUM_CH_Y - 1) ** 2
NUM_EXTRA = NUM_CH_X + NUM_CH_Y

_LANE = 128


def make_wave_extra(dim_y, dim_x, dtype=jnp.float32):
    """Batch-invariant wave channels, shape (NUM_EXTRA, dimY, dimX), channel
    order [extraY(4), extraX(5)] == torch.cat((extraY, extraX), dim=0).

    NOTE: PyTorch builds the sin() phases in float64; without jax_enable_x64
    this runs in float32 (difference << 1e-4 at these sizes)."""
    x_range = jnp.arange(dim_x, dtype=jnp.float32)  # xOffset = 0 (eval)
    y_range = jnp.arange(dim_y, dtype=jnp.float32)  # yOffset = 0 (eval)

    chx = [jnp.sin(x_range * (math.pi * 2.0 / (MIN_CYCLE + CYCLE_STEP_X * i ** 2)))
           for i in range(NUM_CH_X)]
    extra_x = jnp.broadcast_to(jnp.stack(chx)[:, None, :],
                               (NUM_CH_X, dim_y, dim_x))

    chy = [jnp.sin(y_range * (math.pi * 2.0 / (MIN_CYCLE + CYCLE_STEP_Y * i ** 2)))
           for i in range(NUM_CH_Y)]
    extra_y = jnp.broadcast_to(jnp.stack(chy)[:, :, None],
                               (NUM_CH_Y, dim_y, dim_x))

    return jnp.concatenate([extra_y, extra_x], axis=0).astype(dtype)


# ----------------------------------------------------------------------------
# Kernel: direct 'same' KxK conv of one flattened, lane-aligned row tile.
#   x_ref : (1, Cin,       Lx)   flat padded tile, row stride Wpp
#   e_ref : (1, NUM_EXTRA, Lx)   flat padded wave channels for this row tile
#   wx_ref: (K*K, Cout, Cin)        per-tap weights (input-channel part)
#   we_ref: (K*K, Cout, NUM_EXTRA)  per-tap weights (wave-channel part)
#   b_ref : (Cout, 1)               bias (f32)
#   o_ref : (1, Cout, T*Wpp)        lane-dense output tile (garbage cols kept)
# ----------------------------------------------------------------------------
def _coordconv_kernel(x_ref, e_ref, wx_ref, we_ref, b_ref, o_ref, *,
                      tile_h, wpp, ksize):
    K = ksize
    M = tile_h * wpp

    acc = None
    for kh in range(K):
        for kw in range(K):
            t = kh * K + kw
            off = kh * wpp + kw          # kh shifts lane-aligned (wpp % 128 == 0)
            px = x_ref[0, :, off:off + M]            # (Cin, M)
            pe = e_ref[0, :, off:off + M]            # (NUM_EXTRA, M)
            part = jnp.dot(wx_ref[t], px, preferred_element_type=jnp.float32)
            part = part + jnp.dot(we_ref[t], pe,
                                  preferred_element_type=jnp.float32)
            acc = part if acc is None else acc + part

    # Bias add + dtype cast fused into the single, dense, unmasked store.
    o_ref[0, :, :] = (acc + b_ref[...]).astype(o_ref.dtype)


# ----------------------------------------------------------------------------
# Tile-size / VMEM helpers
# ----------------------------------------------------------------------------
def _vmem_per_step_bytes(T, wpp, cin, cout, itemsize, ksize):
    th = T + (ksize - 1)
    lx = th * wpp + _LANE
    m = T * wpp
    return (2 * (cin + NUM_EXTRA) * lx * itemsize   # double-buffered input blocks
            + 2 * cout * m * itemsize               # double-buffered output block
            + 4 * cout * m * 4)                     # f32 accumulator temporaries


def _pick_tile_rows(H, N, target_rows, wpp, cin, cout, itemsize, ksize,
                    budget_bytes=40 << 20):
    divs = sorted(d for d in range(1, H + 1) if H % d == 0)
    cands = [d for d in divs if d <= target_rows]
    T = max(cands) if cands else divs[0]
    # Shrink until the double-buffered working set fits the VMEM budget
    # (v7x has only 64 MiB physical VMEM).
    while (T > divs[0]
           and _vmem_per_step_bytes(T, wpp, cin, cout, itemsize, ksize) > budget_bytes):
        T = max(d for d in divs if d < T)
    # Prefer >= 2 grid steps so both v7x TensorCores get work even at batch=1.
    if N * (H // T) < 2:
        smaller = [d for d in divs if d < T]
        if smaller:
            T = max(smaller)
    return T


# ----------------------------------------------------------------------------
# CoordConv forward (eval mode).  x: (N, Cin, H, W) NCHW,
# w: (Cout, Cin+NUM_EXTRA, K, K) OIHW, bias: (Cout,).  Returns NCHW.
# ----------------------------------------------------------------------------
def coordconv_forward(x_nchw, w_oihw, bias, *, tile_rows=64):
    N, Cin, H, W = x_nchw.shape
    Cout, Ctot, K, K2 = w_oihw.shape
    assert K == K2 and K % 2 == 1, "square odd kernel expected"
    assert Ctot == Cin + NUM_EXTRA
    P = (K - 1) // 2                   # 'same' conv (module default: K=3, pad=1)
    dtype = x_nchw.dtype
    isz = jnp.dtype(dtype).itemsize

    # Lane-aligned flat row stride (aligned kh shifts, dense unmasked stores).
    Wpp = ((W + 2 * P + _LANE - 1) // _LANE) * _LANE

    T = _pick_tile_rows(H, N, tile_rows, Wpp, Cin, Cout, isz, K)
    R = H // T
    Th = T + 2 * P
    M = T * Wpp
    Lx = Th * Wpp + _LANE              # +128: slack for the kw tap shifts

    # ---- Wrapper-side data prep (one relayout copy of x; see TODO above). ---
    # Zero pad: P rows top/bottom, P cols left, Wpp - W - P cols right.
    x_p = jnp.pad(x_nchw, ((0, 0), (0, 0), (P, P), (P, Wpp - W - P)))
    x_t = jnp.stack([x_p[:, :, r * T:r * T + Th, :] for r in range(R)], axis=1)
    x_t = x_t.reshape(N * R, Cin, Th * Wpp)
    x_t = jnp.pad(x_t, ((0, 0), (0, 0), (0, _LANE)))          # (N*R, Cin, Lx)

    # Batch-invariant wave channels, padded/tiled identically (passed once).
    extra = make_wave_extra(H, W, dtype=dtype)                 # (9, H, W)
    e_p = jnp.pad(extra, ((0, 0), (P, P), (P, Wpp - W - P)))   # (9, Hp, Wpp)
    e_t = jnp.stack([e_p[:, r * T:r * T + Th, :] for r in range(R)], axis=0)
    e_t = e_t.reshape(R, NUM_EXTRA, Th * Wpp)
    e_t = jnp.pad(e_t, ((0, 0), (0, 0), (0, _LANE)))           # (R, 9, Lx)

    # Per-tap weights, split into the x part and the wave part.
    w_taps = jnp.transpose(w_oihw, (2, 3, 0, 1)).reshape(K * K, Cout, Ctot)
    w_taps = w_taps.astype(dtype)
    wx = w_taps[:, :, :Cin]                                    # (K*K, Cout, Cin)
    we = w_taps[:, :, Cin:]                                    # (K*K, Cout, 9)
    b2 = bias.reshape(Cout, 1).astype(jnp.float32)

    kernel = functools.partial(_coordconv_kernel, tile_h=T, wpp=Wpp, ksize=K)

    # Explicit scoped-VMEM budget (defaults are only 16/32 MiB per generation).
    vmem_bytes = _vmem_per_step_bytes(T, Wpp, Cin, Cout, isz, K) + (8 << 20)
    vmem_bytes = int(min(max(vmem_bytes, 32 << 20), 48 << 20))

    out_flat = pl.pallas_call(
        kernel,
        out_shape=jax.ShapeDtypeStruct((N, Cout, H * Wpp), dtype),
        grid_spec=pltpu.PrefetchScalarGridSpec(
            num_scalar_prefetch=0,
            # Batch innermost: the wave tile's block index depends only on r,
            # so it stays resident across the whole inner batch loop.
            grid=(R, N),
            in_specs=[
                pl.BlockSpec((1, Cin, Lx), lambda r, n: (n * R + r, 0, 0)),
                pl.BlockSpec((1, NUM_EXTRA, Lx), lambda r, n: (r, 0, 0)),
                pl.BlockSpec((K * K, Cout, Cin), lambda r, n: (0, 0, 0)),
                pl.BlockSpec((K * K, Cout, NUM_EXTRA), lambda r, n: (0, 0, 0)),
                pl.BlockSpec((Cout, 1), lambda r, n: (0, 0)),
            ],
            out_specs=pl.BlockSpec((1, Cout, M), lambda r, n: (n, 0, r)),
        ),
        compiler_params=pltpu.CompilerParams(
            dimension_semantics=("parallel", "parallel"),
            vmem_limit_bytes=vmem_bytes),
    )(x_t, e_t, wx, we, b2)

    # Strip the Wpp - W garbage columns with a single XLA slice.
    return out_flat.reshape(N, Cout, H, Wpp)[:, :, :, :W]


if __name__ == "__main__":
    # Small deterministic example: batch=2, in_ch=4, out_ch=8, spatial=16.
    N, IN_CH, OUT_CH, H, W = 2, 4, 8, 16, 16
    K = 3
    C_TOTAL = IN_CH + NUM_EXTRA  # 13

    key = jax.random.PRNGKey(0)
    kx, kw_, kb = jax.random.split(key, 3)

    x = jax.random.normal(kx, (N, IN_CH, H, W), dtype=jnp.float32)

    # Deterministic parameter init (Conv2d-style uniform bounds).
    fan_in = C_TOTAL * K * K
    bound = 1.0 / math.sqrt(fan_in)
    w = jax.random.uniform(kw_, (OUT_CH, C_TOTAL, K, K),
                           minval=-bound, maxval=bound, dtype=jnp.float32)
    b = jax.random.uniform(kb, (OUT_CH,),
                           minval=-bound, maxval=bound, dtype=jnp.float32)

    # tile_rows=8 -> two row tiles per image (grid (2, 2)), exercising halos.
    out = coordconv_forward(x, w, b, tile_rows=8)
    out = jax.block_until_ready(out)

    # Reference check against XLA conv (same semantics as the PyTorch module).
    extra_b = jnp.broadcast_to(make_wave_extra(H, W)[None],
                               (N, NUM_EXTRA, H, W))
    data = jnp.concatenate([x, extra_b], axis=1)
    ref = lax.conv_general_dilated(
        data, w, window_strides=(1, 1), padding=((1, 1), (1, 1)),
        dimension_numbers=("NCHW", "OIHW", "NCHW")) + b[None, :, None, None]

    assert out.shape == (N, OUT_CH, H, W)
    err = float(jnp.max(jnp.abs(out - ref)))
    assert jnp.allclose(out, ref, atol=5e-4, rtol=5e-4), err

    print("KERNEL_OK")
</pallas_src>

<mosaic_0001>
module attributes {stable_mosaic.version = 11 : i64} {
  func.func @_coordconv_kernel(%arg0: i32, %arg1: i32, %arg2: memref<1x4x1408xf32, #tpu.memory_space<vmem>>, %arg3: memref<1x9x1408xf32, #tpu.memory_space<vmem>>, %arg4: memref<9x8x4xf32, #tpu.memory_space<vmem>>, %arg5: memref<9x8x9xf32, #tpu.memory_space<vmem>>, %arg6: memref<8x1xf32, #tpu.memory_space<vmem>>, %arg7: memref<1x8x1024xf32, #tpu.memory_space<vmem>>) attributes {dimension_semantics = [#tpu.dimension_semantics<parallel>, #tpu.dimension_semantics<parallel>], iteration_bounds = array<i64: 2, 2>, scalar_prefetch = 0 : i64, scratch_operands = 0 : i64, tpu.core_type = #tpu.core_type<tc>, window_params = [{transform_indices = @transform_0, window_bounds = array<i64: 1, 4, 1408>}, {transform_indices = @transform_1, window_bounds = array<i64: 1, 9, 1408>}, {pipeline_mode = #tpu.pipeline_mode<synchronous>, transform_indices = @transform_2, window_bounds = array<i64: 9, 8, 4>}, {pipeline_mode = #tpu.pipeline_mode<synchronous>, transform_indices = @transform_3, window_bounds = array<i64: 9, 8, 9>}, {pipeline_mode = #tpu.pipeline_mode<synchronous>, transform_indices = @transform_4, window_bounds = array<i64: 8, 1>}, {transform_indices = @transform_5, window_bounds = array<i64: 1, 8, 1024>}]} {
    %c0 = arith.constant 0 : index
    %c0_0 = arith.constant 0 : index
    %c0_1 = arith.constant 0 : index
    %0 = vector.load %arg2[%c0, %c0_0, %c0_1] : memref<1x4x1408xf32, #tpu.memory_space<vmem>>, vector<1x4x1024xf32>
    %1 = vector.shape_cast %0 : vector<1x4x1024xf32> to vector<4x1024xf32>
    %c0_2 = arith.constant 0 : index
    %c0_3 = arith.constant 0 : index
    %c0_4 = arith.constant 0 : index
    %2 = vector.load %arg3[%c0_2, %c0_3, %c0_4] : memref<1x9x1408xf32, #tpu.memory_space<vmem>>, vector<1x9x1024xf32>
    %3 = vector.shape_cast %2 : vector<1x9x1024xf32> to vector<9x1024xf32>
    %c0_5 = arith.constant 0 : index
    %c0_6 = arith.constant 0 : index
    %c0_7 = arith.constant 0 : index
    %4 = vector.load %arg4[%c0_5, %c0_6, %c0_7] : memref<9x8x4xf32, #tpu.memory_space<vmem>>, vector<1x8x4xf32>
    %5 = vector.shape_cast %4 : vector<1x8x4xf32> to vector<8x4xf32>
    %cst = arith.constant dense<0.000000e+00> : vector<8x1024xf32>
    %6 = tpu.matmul %5, %1, %cst {dimension_numbers = #tpu.dot_dimension_numbers<[1], [0], [0], [1], [0, 0, 1, 1], [], []>} : vector<8x4xf32>, vector<4x1024xf32>, vector<8x1024xf32> -> vector<8x1024xf32>
    %c0_8 = arith.constant 0 : index
    %c0_9 = arith.constant 0 : index
    %c0_10 = arith.constant 0 : index
    %7 = vector.load %arg5[%c0_8, %c0_9, %c0_10] : memref<9x8x9xf32, #tpu.memory_space<vmem>>, vector<1x8x9xf32>
    %8 = vector.shape_cast %7 : vector<1x8x9xf32> to vector<8x9xf32>
    %cst_11 = arith.constant dense<0.000000e+00> : vector<8x1024xf32>
    %9 = tpu.matmul %8, %3, %cst_11 {dimension_numbers = #tpu.dot_dimension_numbers<[1], [0], [0], [1], [0, 0, 1, 1], [], []>} : vector<8x9xf32>, vector<9x1024xf32>, vector<8x1024xf32> -> vector<8x1024xf32>
    %10 = arith.addf %6, %9 : vector<8x1024xf32>
    %c0_12 = arith.constant 0 : index
    %c0_13 = arith.constant 0 : index
    %c1 = arith.constant 1 : index
    %11 = vector.load %arg2[%c0_12, %c0_13, %c1] : memref<1x4x1408xf32, #tpu.memory_space<vmem>>, vector<1x4x1024xf32>
    %12 = vector.shape_cast %11 : vector<1x4x1024xf32> to vector<4x1024xf32>
    %c0_14 = arith.constant 0 : index
    %c0_15 = arith.constant 0 : index
    %c1_16 = arith.constant 1 : index
    %13 = vector.load %arg3[%c0_14, %c0_15, %c1_16] : memref<1x9x1408xf32, #tpu.memory_space<vmem>>, vector<1x9x1024xf32>
    %14 = vector.shape_cast %13 : vector<1x9x1024xf32> to vector<9x1024xf32>
    %c1_17 = arith.constant 1 : index
    %c0_18 = arith.constant 0 : index
    %c0_19 = arith.constant 0 : index
    %15 = vector.load %arg4[%c1_17, %c0_18, %c0_19] : memref<9x8x4xf32, #tpu.memory_space<vmem>>, vector<1x8x4xf32>
    %16 = vector.shape_cast %15 : vector<1x8x4xf32> to vector<8x4xf32>
    %cst_20 = arith.constant dense<0.000000e+00> : vector<8x1024xf32>
    %17 = tpu.matmul %16, %12, %cst_20 {dimension_numbers = #tpu.dot_dimension_numbers<[1], [0], [0], [1], [0, 0, 1, 1], [], []>} : vector<8x4xf32>, vector<4x1024xf32>, vector<8x1024xf32> -> vector<8x1024xf32>
    %c1_21 = arith.constant 1 : index
    %c0_22 = arith.constant 0 : index
    %c0_23 = arith.constant 0 : index
    %18 = vector.load %arg5[%c1_21, %c0_22, %c0_23] : memref<9x8x9xf32, #tpu.memory_space<vmem>>, vector<1x8x9xf32>
    %19 = vector.shape_cast %18 : vector<1x8x9xf32> to vector<8x9xf32>
    %cst_24 = arith.constant dense<0.000000e+00> : vector<8x1024xf32>
    %20 = tpu.matmul %19, %14, %cst_24 {dimension_numbers = #tpu.dot_dimension_numbers<[1], [0], [0], [1], [0, 0, 1, 1], [], []>} : vector<8x9xf32>, vector<9x1024xf32>, vector<8x1024xf32> -> vector<8x1024xf32>
    %21 = arith.addf %17, %20 : vector<8x1024xf32>
    %22 = arith.addf %10, %21 : vector<8x1024xf32>
    %c0_25 = arith.constant 0 : index
    %c0_26 = arith.constant 0 : index
    %c2 = arith.constant 2 : index
    %23 = vector.load %arg2[%c0_25, %c0_26, %c2] : memref<1x4x1408xf32, #tpu.memory_space<vmem>>, vector<1x4x1024xf32>
    %24 = vector.shape_cast %23 : vector<1x4x1024xf32> to vector<4x1024xf32>
    %c0_27 = arith.constant 0 : index
    %c0_28 = arith.constant 0 : index
    %c2_29 = arith.constant 2 : index
    %25 = vector.load %arg3[%c0_27, %c0_28, %c2_29] : memref<1x9x1408xf32, #tpu.memory_space<vmem>>, vector<1x9x1024xf32>
    %26 = vector.shape_cast %25 : vector<1x9x1024xf32> to vector<9x1024xf32>
    %c2_30 = arith.constant 2 : index
    %c0_31 = arith.constant 0 : index
    %c0_32 = arith.constant 0 : index
    %27 = vector.load %arg4[%c2_30, %c0_31, %c0_32] : memref<9x8x4xf32, #tpu.memory_space<vmem>>, vector<1x8x4xf32>
    %28 = vector.shape_cast %27 : vector<1x8x4xf32> to vector<8x4xf32>
    %cst_33 = arith.constant dense<0.000000e+00> : vector<8x1024xf32>
    %29 = tpu.matmul %28, %24, %cst_33 {dimension_numbers = #tpu.dot_dimension_numbers<[1], [0], [0], [1], [0, 0, 1, 1], [], []>} : vector<8x4xf32>, vector<4x1024xf32>, vector<8x1024xf32> -> vector<8x1024xf32>
    %c2_34 = arith.constant 2 : index
    %c0_35 = arith.constant 0 : index
    %c0_36 = arith.constant 0 : index
    %30 = vector.load %arg5[%c2_34, %c0_35, %c0_36] : memref<9x8x9xf32, #tpu.memory_space<vmem>>, vector<1x8x9xf32>
    %31 = vector.shape_cast %30 : vector<1x8x9xf32> to vector<8x9xf32>
    %cst_37 = arith.constant dense<0.000000e+00> : vector<8x1024xf32>
    %32 = tpu.matmul %31, %26, %cst_37 {dimension_numbers = #tpu.dot_dimension_numbers<[1], [0], [0], [1], [0, 0, 1, 1], [], []>} : vector<8x9xf32>, vector<9x1024xf32>, vector<8x1024xf32> -> vector<8x1024xf32>
    %33 = arith.addf %29, %32 : vector<8x1024xf32>
    %34 = arith.addf %22, %33 : vector<8x1024xf32>
    %c0_38 = arith.constant 0 : index
    %c0_39 = arith.constant 0 : index
    %c128 = arith.constant 128 : index
    %35 = vector.load %arg2[%c0_38, %c0_39, %c128] : memref<1x4x1408xf32, #tpu.memory_space<vmem>>, vector<1x4x1024xf32>
    %36 = vector.shape_cast %35 : vector<1x4x1024xf32> to vector<4x1024xf32>
    %c0_40 = arith.constant 0 : index
    %c0_41 = arith.constant 0 : index
    %c128_42 = arith.constant 128 : index
    %37 = vector.load %arg3[%c0_40, %c0_41, %c128_42] : memref<1x9x1408xf32, #tpu.memory_space<vmem>>, vector<1x9x1024xf32>
    %38 = vector.shape_cast %37 : vector<1x9x1024xf32> to vector<9x1024xf32>
    %c3 = arith.constant 3 : index
    %c0_43 = arith.constant 0 : index
    %c0_44 = arith.constant 0 : index
    %39 = vector.load %arg4[%c3, %c0_43, %c0_44] : memref<9x8x4xf32, #tpu.memory_space<vmem>>, vector<1x8x4xf32>
    %40 = vector.shape_cast %39 : vector<1x8x4xf32> to vector<8x4xf32>
    %cst_45 = arith.constant dense<0.000000e+00> : vector<8x1024xf32>
    %41 = tpu.matmul %40, %36, %cst_45 {dimension_numbers = #tpu.dot_dimension_numbers<[1], [0], [0], [1], [0, 0, 1, 1], [], []>} : vector<8x4xf32>, vector<4x1024xf32>, vector<8x1024xf32> -> vector<8x1024xf32>
    %c3_46 = arith.constant 3 : index
    %c0_47 = arith.constant 0 : index
    %c0_48 = arith.constant 0 : index
    %42 = vector.load %arg5[%c3_46, %c0_47, %c0_48] : memref<9x8x9xf32, #tpu.memory_space<vmem>>, vector<1x8x9xf32>
    %43 = vector.shape_cast %42 : vector<1x8x9xf32> to vector<8x9xf32>
    %cst_49 = arith.constant dense<0.000000e+00> : vector<8x1024xf32>
    %44 = tpu.matmul %43, %38, %cst_49 {dimension_numbers = #tpu.dot_dimension_numbers<[1], [0], [0], [1], [0, 0, 1, 1], [], []>} : vector<8x9xf32>, vector<9x1024xf32>, vector<8x1024xf32> -> vector<8x1024xf32>
    %45 = arith.addf %41, %44 : vector<8x1024xf32>
    %46 = arith.addf %34, %45 : vector<8x1024xf32>
    %c0_50 = arith.constant 0 : index
    %c0_51 = arith.constant 0 : index
    %c129 = arith.constant 129 : index
    %47 = vector.load %arg2[%c0_50, %c0_51, %c129] : memref<1x4x1408xf32, #tpu.memory_space<vmem>>, vector<1x4x1024xf32>
    %48 = vector.shape_cast %47 : vector<1x4x1024xf32> to vector<4x1024xf32>
    %c0_52 = arith.constant 0 : index
    %c0_53 = arith.constant 0 : index
    %c129_54 = arith.constant 129 : index
    %49 = vector.load %arg3[%c0_52, %c0_53, %c129_54] : memref<1x9x1408xf32, #tpu.memory_space<vmem>>, vector<1x9x1024xf32>
    %50 = vector.shape_cast %49 : vector<1x9x1024xf32> to vector<9x1024xf32>
    %c4 = arith.constant 4 : index
    %c0_55 = arith.constant 0 : index
    %c0_56 = arith.constant 0 : index
    %51 = vector.load %arg4[%c4, %c0_55, %c0_56] : memref<9x8x4xf32, #tpu.memory_space<vmem>>, vector<1x8x4xf32>
    %52 = vector.shape_cast %51 : vector<1x8x4xf32> to vector<8x4xf32>
    %cst_57 = arith.constant dense<0.000000e+00> : vector<8x1024xf32>
    %53 = tpu.matmul %52, %48, %cst_57 {dimension_numbers = #tpu.dot_dimension_numbers<[1], [0], [0], [1], [0, 0, 1, 1], [], []>} : vector<8x4xf32>, vector<4x1024xf32>, vector<8x1024xf32> -> vector<8x1024xf32>
    %c4_58 = arith.constant 4 : index
    %c0_59 = arith.constant 0 : index
    %c0_60 = arith.constant 0 : index
    %54 = vector.load %arg5[%c4_58, %c0_59, %c0_60] : memref<9x8x9xf32, #tpu.memory_space<vmem>>, vector<1x8x9xf32>
    %55 = vector.shape_cast %54 : vector<1x8x9xf32> to vector<8x9xf32>
    %cst_61 = arith.constant dense<0.000000e+00> : vector<8x1024xf32>
    %56 = tpu.matmul %55, %50, %cst_61 {dimension_numbers = #tpu.dot_dimension_numbers<[1], [0], [0], [1], [0, 0, 1, 1], [], []>} : vector<8x9xf32>, vector<9x1024xf32>, vector<8x1024xf32> -> vector<8x1024xf32>
    %57 = arith.addf %53, %56 : vector<8x1024xf32>
    %58 = arith.addf %46, %57 : vector<8x1024xf32>
    %c0_62 = arith.constant 0 : index
    %c0_63 = arith.constant 0 : index
    %c130 = arith.constant 130 : index
    %59 = vector.load %arg2[%c0_62, %c0_63, %c130] : memref<1x4x1408xf32, #tpu.memory_space<vmem>>, vector<1x4x1024xf32>
    %60 = vector.shape_cast %59 : vector<1x4x1024xf32> to vector<4x1024xf32>
    %c0_64 = arith.constant 0 : index
    %c0_65 = arith.constant 0 : index
    %c130_66 = arith.constant 130 : index
    %61 = vector.load %arg3[%c0_64, %c0_65, %c130_66] : memref<1x9x1408xf32, #tpu.memory_space<vmem>>, vector<1x9x1024xf32>
    %62 = vector.shape_cast %61 : vector<1x9x1024xf32> to vector<9x1024xf32>
    %c5 = arith.constant 5 : index
    %c0_67 = arith.constant 0 : index
    %c0_68 = arith.constant 0 : index
    %63 = vector.load %arg4[%c5, %c0_67, %c0_68] : memref<9x8x4xf32, #tpu.memory_space<vmem>>, vector<1x8x4xf32>
    %64 = vector.shape_cast %63 : vector<1x8x4xf32> to vector<8x4xf32>
    %cst_69 = arith.constant dense<0.000000e+00> : vector<8x1024xf32>
    %65 = tpu.matmul %64, %60, %cst_69 {dimension_numbers = #tpu.dot_dimension_numbers<[1], [0], [0], [1], [0, 0, 1, 1], [], []>} : vector<8x4xf32>, vector<4x1024xf32>, vector<8x1024xf32> -> vector<8x1024xf32>
    %c5_70 = arith.constant 5 : index
    %c0_71 = arith.constant 0 : index
    %c0_72 = arith.constant 0 : index
    %66 = vector.load %arg5[%c5_70, %c0_71, %c0_72] : memref<9x8x9xf32, #tpu.memory_space<vmem>>, vector<1x8x9xf32>
    %67 = vector.shape_cast %66 : vector<1x8x9xf32> to vector<8x9xf32>
    %cst_73 = arith.constant dense<0.000000e+00> : vector<8x1024xf32>
    %68 = tpu.matmul %67, %62, %cst_73 {dimension_numbers = #tpu.dot_dimension_numbers<[1], [0], [0], [1], [0, 0, 1, 1], [], []>} : vector<8x9xf32>, vector<9x1024xf32>, vector<8x1024xf32> -> vector<8x1024xf32>
    %69 = arith.addf %65, %68 : vector<8x1024xf32>
    %70 = arith.addf %58, %69 : vector<8x1024xf32>
    %c0_74 = arith.constant 0 : index
    %c0_75 = arith.constant 0 : index
    %c256 = arith.constant 256 : index
    %71 = vector.load %arg2[%c0_74, %c0_75, %c256] : memref<1x4x1408xf32, #tpu.memory_space<vmem>>, vector<1x4x1024xf32>
    %72 = vector.shape_cast %71 : vector<1x4x1024xf32> to vector<4x1024xf32>
    %c0_76 = arith.constant 0 : index
    %c0_77 = arith.constant 0 : index
    %c256_78 = arith.constant 256 : index
    %73 = vector.load %arg3[%c0_76, %c0_77, %c256_78] : memref<1x9x1408xf32, #tpu.memory_space<vmem>>, vector<1x9x1024xf32>
    %74 = vector.shape_cast %73 : vector<1x9x1024xf32> to vector<9x1024xf32>
    %c6 = arith.constant 6 : index
    %c0_79 = arith.constant 0 : index
    %c0_80 = arith.constant 0 : index
    %75 = vector.load %arg4[%c6, %c0_79, %c0_80] : memref<9x8x4xf32, #tpu.memory_space<vmem>>, vector<1x8x4xf32>
    %76 = vector.shape_cast %75 : vector<1x8x4xf32> to vector<8x4xf32>
    %cst_81 = arith.constant dense<0.000000e+00> : vector<8x1024xf32>
    %77 = tpu.matmul %76, %72, %cst_81 {dimension_numbers = #tpu.dot_dimension_numbers<[1], [0], [0], [1], [0, 0, 1, 1], [], []>} : vector<8x4xf32>, vector<4x1024xf32>, vector<8x1024xf32> -> vector<8x1024xf32>
    %c6_82 = arith.constant 6 : index
    %c0_83 = arith.constant 0 : index
    %c0_84 = arith.constant 0 : index
    %78 = vector.load %arg5[%c6_82, %c0_83, %c0_84] : memref<9x8x9xf32, #tpu.memory_space<vmem>>, vector<1x8x9xf32>
    %79 = vector.shape_cast %78 : vector<1x8x9xf32> to vector<8x9xf32>
    %cst_85 = arith.constant dense<0.000000e+00> : vector<8x1024xf32>
    %80 = tpu.matmul %79, %74, %cst_85 {dimension_numbers = #tpu.dot_dimension_numbers<[1], [0], [0], [1], [0, 0, 1, 1], [], []>} : vector<8x9xf32>, vector<9x1024xf32>, vector<8x1024xf32> -> vector<8x1024xf32>
    %81 = arith.addf %77, %80 : vector<8x1024xf32>
    %82 = arith.addf %70, %81 : vector<8x1024xf32>
    %c0_86 = arith.constant 0 : index
    %c0_87 = arith.constant 0 : index
    %c257 = arith.constant 257 : index
    %83 = vector.load %arg2[%c0_86, %c0_87, %c257] : memref<1x4x1408xf32, #tpu.memory_space<vmem>>, vector<1x4x1024xf32>
    %84 = vector.shape_cast %83 : vector<1x4x1024xf32> to vector<4x1024xf32>
    %c0_88 = arith.constant 0 : index
    %c0_89 = arith.constant 0 : index
    %c257_90 = arith.constant 257 : index
    %85 = vector.load %arg3[%c0_88, %c0_89, %c257_90] : memref<1x9x1408xf32, #tpu.memory_space<vmem>>, vector<1x9x1024xf32>
    %86 = vector.shape_cast %85 : vector<1x9x1024xf32> to vector<9x1024xf32>
    %c7 = arith.constant 7 : index
    %c0_91 = arith.constant 0 : index
    %c0_92 = arith.constant 0 : index
    %87 = vector.load %arg4[%c7, %c0_91, %c0_92] : memref<9x8x4xf32, #tpu.memory_space<vmem>>, vector<1x8x4xf32>
    %88 = vector.shape_cast %87 : vector<1x8x4xf32> to vector<8x4xf32>
    %cst_93 = arith.constant dense<0.000000e+00> : vector<8x1024xf32>
    %89 = tpu.matmul %88, %84, %cst_93 {dimension_numbers = #tpu.dot_dimension_numbers<[1], [0], [0], [1], [0, 0, 1, 1], [], []>} : vector<8x4xf32>, vector<4x1024xf32>, vector<8x1024xf32> -> vector<8x1024xf32>
    %c7_94 = arith.constant 7 : index
    %c0_95 = arith.constant 0 : index
    %c0_96 = arith.constant 0 : index
    %90 = vector.load %arg5[%c7_94, %c0_95, %c0_96] : memref<9x8x9xf32, #tpu.memory_space<vmem>>, vector<1x8x9xf32>
    %91 = vector.shape_cast %90 : vector<1x8x9xf32> to vector<8x9xf32>
    %cst_97 = arith.constant dense<0.000000e+00> : vector<8x1024xf32>
    %92 = tpu.matmul %91, %86, %cst_97 {dimension_numbers = #tpu.dot_dimension_numbers<[1], [0], [0], [1], [0, 0, 1, 1], [], []>} : vector<8x9xf32>, vector<9x1024xf32>, vector<8x1024xf32> -> vector<8x1024xf32>
    %93 = arith.addf %89, %92 : vector<8x1024xf32>
    %94 = arith.addf %82, %93 : vector<8x1024xf32>
    %c0_98 = arith.constant 0 : index
    %c0_99 = arith.constant 0 : index
    %c258 = arith.constant 258 : index
    %95 = vector.load %arg2[%c0_98, %c0_99, %c258] : memref<1x4x1408xf32, #tpu.memory_space<vmem>>, vector<1x4x1024xf32>
    %96 = vector.shape_cast %95 : vector<1x4x1024xf32> to vector<4x1024xf32>
    %c0_100 = arith.constant 0 : index
    %c0_101 = arith.constant 0 : index
    %c258_102 = arith.constant 258 : index
    %97 = vector.load %arg3[%c0_100, %c0_101, %c258_102] : memref<1x9x1408xf32, #tpu.memory_space<vmem>>, vector<1x9x1024xf32>
    %98 = vector.shape_cast %97 : vector<1x9x1024xf32> to vector<9x1024xf32>
    %c8 = arith.constant 8 : index
    %c0_103 = arith.constant 0 : index
    %c0_104 = arith.constant 0 : index
    %99 = vector.load %arg4[%c8, %c0_103, %c0_104] : memref<9x8x4xf32, #tpu.memory_space<vmem>>, vector<1x8x4xf32>
    %100 = vector.shape_cast %99 : vector<1x8x4xf32> to vector<8x4xf32>
    %cst_105 = arith.constant dense<0.000000e+00> : vector<8x1024xf32>
    %101 = tpu.matmul %100, %96, %cst_105 {dimension_numbers = #tpu.dot_dimension_numbers<[1], [0], [0], [1], [0, 0, 1, 1], [], []>} : vector<8x4xf32>, vector<4x1024xf32>, vector<8x1024xf32> -> vector<8x1024xf32>
    %c8_106 = arith.constant 8 : index
    %c0_107 = arith.constant 0 : index
    %c0_108 = arith.constant 0 : index
    %102 = vector.load %arg5[%c8_106, %c0_107, %c0_108] : memref<9x8x9xf32, #tpu.memory_space<vmem>>, vector<1x8x9xf32>
    %103 = vector.shape_cast %102 : vector<1x8x9xf32> to vector<8x9xf32>
    %cst_109 = arith.constant dense<0.000000e+00> : vector<8x1024xf32>
    %104 = tpu.matmul %103, %98, %cst_109 {dimension_numbers = #tpu.dot_dimension_numbers<[1], [0], [0], [1], [0, 0, 1, 1], [], []>} : vector<8x9xf32>, vector<9x1024xf32>, vector<8x1024xf32> -> vector<8x1024xf32>
    %105 = arith.addf %101, %104 : vector<8x1024xf32>
    %106 = arith.addf %94, %105 : vector<8x1024xf32>
    %c0_110 = arith.constant 0 : index
    %c0_111 = arith.constant 0 : index
    %107 = vector.load %arg6[%c0_110, %c0_111] : memref<8x1xf32, #tpu.memory_space<vmem>>, vector<8x1xf32>
    %108 = vector.broadcast %107 : vector<8x1xf32> to vector<8x1024xf32>
    %109 = arith.addf %106, %108 : vector<8x1024xf32>
    %c0_112 = arith.constant 0 : index
    %c0_113 = arith.constant 0 : index
    %c0_114 = arith.constant 0 : index
    %110 = vector.load %arg7[%c0_112, %c0_113, %c0_114] : memref<1x8x1024xf32, #tpu.memory_space<vmem>>, vector<1x8x1024xf32>
    %111 = vector.shape_cast %110 : vector<1x8x1024xf32> to vector<8x1024xf32>
    %112 = vector.shape_cast %109 : vector<8x1024xf32> to vector<1x8x1024xf32>
    tpu.vector_store %arg7[%c0_112, %c0_113, %c0_114], %112 {strides = array<i32>} : memref<1x8x1024xf32, #tpu.memory_space<vmem>>, vector<1x8x1024xf32>,
    return
  }
  func.func @transform_0(%arg0: i32, %arg1: i32) -> (i32, i32, i32) {
    %c2_i32 = arith.constant 2 : i32
    %0 = arith.muli %arg1, %c2_i32 : i32
    %1 = arith.addi %0, %arg0 : i32
    %c0_i32 = arith.constant 0 : i32
    %c0_i32_0 = arith.constant 0 : i32
    %c0_i32_1 = arith.constant 0 : i32
    return %1, %c0_i32, %c0_i32_0 : i32, i32, i32
  }
  func.func @transform_1(%arg0: i32, %arg1: i32) -> (i32, i32, i32) {
    %c0_i32 = arith.constant 0 : i32
    %c0_i32_0 = arith.constant 0 : i32
    %c0_i32_1 = arith.constant 0 : i32
    return %arg0, %c0_i32, %c0_i32_0 : i32, i32, i32
  }
  func.func @transform_2(%arg0: i32, %arg1: i32) -> (i32, i32, i32) {
    %c0_i32 = arith.constant 0 : i32
    %c0_i32_0 = arith.constant 0 : i32
    %c0_i32_1 = arith.constant 0 : i32
    %c0_i32_2 = arith.constant 0 : i32
    return %c0_i32, %c0_i32_0, %c0_i32_1 : i32, i32, i32
  }
  func.func @transform_3(%arg0: i32, %arg1: i32) -> (i32, i32, i32) {
    %c0_i32 = arith.constant 0 : i32
    %c0_i32_0 = arith.constant 0 : i32
    %c0_i32_1 = arith.constant 0 : i32
    %c0_i32_2 = arith.constant 0 : i32
    return %c0_i32, %c0_i32_0, %c0_i32_1 : i32, i32, i32
  }
  func.func @transform_4(%arg0: i32, %arg1: i32) -> (i32, i32) {
    %c0_i32 = arith.constant 0 : i32
    %c0_i32_0 = arith.constant 0 : i32
    %c0_i32_1 = arith.constant 0 : i32
    return %c0_i32, %c0_i32_0 : i32, i32
  }
  func.func @transform_5(%arg0: i32, %arg1: i32) -> (i32, i32, i32) {
    %c0_i32 = arith.constant 0 : i32
    %c0_i32_0 = arith.constant 0 : i32
    return %arg1, %c0_i32, %arg0 : i32, i32, i32
  }
}

</mosaic_0001>

<bundles_post_ra>
// kernel: tpu_custom_call.1
= control target key start
LH: loop header
LB: loop body
LE: loop exit
PB: predicated region body
PF: predicated region fallthrough
CT: control target
= control target key end

     0   :  { %10 = vsyncpa [#allocation3], 0  ;;  %s9206_s0 = inlined_call_operand.vmem [shape: f32[4,4,1408], index: 0, kind: input, shape index: {}]   ;;  %s9207_s1 = inlined_call_operand.vmem [shape: f32[2,9,1408], index: 1, kind: input, shape index: {}]   ;;  %s9208_s2 = inlined_call_operand.vmem [shape: f32[9,8,4], index: 2, kind: input, shape index: {}]   ;;  %s9209_s3 = inlined_call_operand.vmem [shape: f32[9,8,9], index: 3, kind: input, shape index: {}]   ;;  %s9210_s4 = inlined_call_operand.vmem [shape: f32[8,1], index: 4, kind: input, shape index: {}]   ;;  %s9211_s5 = inlined_call_operand.hbm [shape: f32[2,8,2048], index: 5, kind: output, shape index: {}]  }
   0x1   :  { %12 = vsyncpa [#allocation3 + $0x1], 0  ;;  %s7974_s18 = smov 0   ;;  %s7976_s19 = smov 0  }
   0x2   :  { %s7978_s20 = smov 0   ;;  %s7980_s21 = smov 0  }
   0x3   :  { %s7982_s22 = smov 0   ;;  %s7984_s23 = smov 0  }
   0x4   :  { %s7986_s24 = smov 0   ;;  %s7988_s25 = smov 0  }
   0x5 LB: > { %s6878_s26 = sadd.s32 4294967295, %s7936_s25   ;;  %s6879_s27 = sadd.s32 4294967294, %s7936_s25   ;;  %s7936_s25 = sphi %s7988_s25, %s18_s25   ;;  %s7932_s24 = sphi %s7986_s24, %s9222_s24   ;;  %s7928_s23 = sphi %s7984_s23, %s9221_s23   ;;  %s7924_s22 = sphi %s7982_s22, %s9220_s22   ;;  %s7920_s21 = sphi %s7980_s21, %s9219_s21   ;;  %s7916_s20 = sphi %s7978_s20, %s9218_s20   ;;  %s7912_s19 = sphi %s7976_s19, %s9217_s19   ;;  %s7908_s18 = sphi %s7974_s18, %s9216_s18  }
   0x6   : > { %s27_s28 = sadd.s32 1, %s7928_s23  ;;  %s30_s29 = sadd.s32 1, %s7932_s24 }
   0x7   : > { %p28_p0 = scmp.ge.s32.totalorder %s27_s28, 2  ;;  %p168_p1 = scmp.ne.s32.totalorder %s7916_s20, %s7912_s19 }
   0x8   : > { %p169_p2 = scmp.eq.s32.totalorder %s6878_s26, 3  ;;  %p174_p5 = scmp.ne.s32.totalorder %s7912_s19, %s7908_s18 }
   0x9   : > { %s9224_s28 = smov (%p28_p0, %s27_s28), 0  ;;  %s9226_s29 = smov (!%p28_p0, %s30_s29), %s7932_s24 }
   0xa   : > { %s153_s30 = ssub.s32 %s7928_s23, %s9224_s28  ;;  %p8025_p3 = por %p169_p2, %p168_p1 }
   0xb   : > { %p32_p4 = scmp.ge.s32.totalorder %s9226_s29, 2  ;;  %p175_p6 = scmp.eq.s32.totalorder %s6879_s27, 3 }
   0xc   : > { %p6884_p7 = scmp.ge.s32.totalorder %s7936_s25, 1  ;;  %p222_p9 = scmp.lt.s32.totalorder %s7936_s25, 5 }
   0xd   : > { %s9228_s29 = smov (%p32_p4, %s9226_s29), 0  ;;  %p8034_p8 = por %p175_p6, %p174_p5 }
   0xe   : > { %s154_s8 = ssub.s32 %s7932_s24, %s9228_s29  ;;  %s158_s9 = sadd.s32 1, %s7916_s20 }
   0xf   : > { %s155_s10 = sor.u32 %s154_s8, %s153_s30  ;;  %p223_p10 = pnand %p6884_p7, %p222_p9 }
  0x10   : > { %p156_p11 = scmp.eq.s32.totalorder %s155_s10, 0  ;;  %p266_p12 = scmp.lt.s32.totalorder (!%p223_p10), %s7924_s22, 1  ;;  %v7938_v0 = vmov (!%p223_p10), 0.0   ;;  %vm298_vm0 = vcmask (!%p223_p10), 1040384   ;;  %vm7940_vm1 = vmmov (!%p223_p10), 1   ;;  %v293_v49 = vld [vmem:[%s9209_s3] sm:$0xff] (!%p223_p10) }
  0x11   : > { %226 = sbr.rel (%p223_p10) target bundleno = 597 (0x255), region = 40  ;;  %s6886_s12 = sshll.u32 (!%p223_p10), %s7920_s21, 1  ;;  %387 = vmatprep.mubr.f32.mxu0 (!%p223_p10), %v7938_v0  ;;  %458 = vmatprep.mubr.f32.mxu1 (!%p223_p10), %v7938_v0  ;;  %vm8134_vm2 = vmpackc.low (!%p223_p10), %vm298_vm0, %vm7940_vm1  ;;  %vm294_vm3 = vcmask (!%p223_p10), 72704   ;;  %vm619_vm4 = vcmask (!%p223_p10), 1043456   ;;  %v292_v56 = vld [vmem:[%s9208_s2] sm:$0xff] (!%p223_p10)  ;;  %vm615_vm5 = vcmask (!%p223_p10), 31744  }
  0x12   : > { %s8043_s11 = scalar_select %p156_p11, %s7916_s20, %s158_s9  }
  0x13   : > { %s258_s14 = sadd.s32 (!%p223_p10), %s7924_s22, %s6886_s12  ;;  %s7939_s27 = smov (!%p223_p10), 127   ;;  %vm1001_vm6 = vcmask (!%p223_p10), 1039360   ;;  %vm1756_vm7 = vcmask (!%p223_p10), 1031168  }
  0x14   : > { %p259_p13 = scmp.lt.s32.totalorder (!%p223_p10), %s258_s14, 3  ;;  %s7941_s16 = smov (!%p223_p10), 126  }
  0x15   : > { %s254_s8 = sand.u32 (!%p223_p10), 1, %s7912_s19   ;;  %s7123_s12 = sshll.u32 (!%p223_p10), %s7920_s21, 4 }
  0x16   : > { %s6885_s9 = sshll.u32 (!%p223_p10), %s254_s8, 6 }
  0x18   : > { %s267_s13 = scalar_select %p266_p12, %s7924_s22, 1 }
  0x19   : > { %s9230_s14 = smov (!%p259_p13, %s258_s14), 3 }
  0x1a   : > { %s7480_s15 = smul.u32 176, %s267_s13  ;;  %s256_s13 = scalar_lea.vmem [#allocation2], %s6885_s9 }
  0x1b   : > { %s7479_s30 = smul.u32 44, %s9230_s14 }
  0x1c   : > { %s8054_s26 = scalar_lea.vmem %s9207_s1, %s7480_s15 }
  0x1d   : > { %v935_v1 = vld [vmem:[%s8054_s26 + $0x60] sm:$0x1]  ;;  %v936_v2 = vld [vmem:[%s8054_s26 + $0x68] sm:$0x1]  ;;  %v8062_v5 = vld [vmem:[%s8054_s26 + $0x10] sm:$0xff]  ;;  %s8113_s10 = scalar_lea.vmem %s9206_s0, %s7479_s30  ;;  %s7943_s30 = smov [#allocation2]  }
  0x1e   : > { %v8059_v3 = vld [vmem:[%s8054_s26 + $0x8] sm:$0xff]  ;;  %v7567_v4 = vpack.i.bf16 %v936_v2, %v935_v1  ;;  %v937_v6 = vld [vmem:[%s8054_s26 + $0x70] sm:$0x1]  ;;  %v938_v7 = vld [vmem:[%s8054_s26 + $0x78] sm:$0x1]  ;;  %s7846_s9 = sshll.u32 %s7943_s30, 4  ;;  %s7847_s9 = int_to_ptr.vmem [resolvable:$false] %s7846_s9 }
  0x1f   : > { %v8068_v8 = vpack.i.bf16 %v8062_v5, %v8059_v3  ;;  %v928_v9 = vld [vmem:[%s8054_s26 + $0x18] sm:$0xff]  ;;  %v8072_v10 = vld [vmem:[%s8054_s26 + $0x20] sm:$0xff]  ;;  %v930_v11 = vld [vmem:[%s8054_s26 + $0x28] sm:$0xff]  ;;  %v7572_v12 = vpack.i.bf16 %v938_v7, %v937_v6 }
  0x20   : > { %7568 = vrot.lane.b32.xlu1 %v7567_v4, %s7939_s27  ;;  %v8077_v13 = vpack.i.bf16 %v928_v9, %v8062_v5  ;;  %v8080_v14 = vpack.i.bf16 %v930_v11, %v8072_v10  ;;  %v8085_v15 = vpack.i.bf16 %v8072_v10, %v928_v9  ;;  %v8088_v16 = vld [vmem:[%s8054_s26 + $0x30] sm:$0xff]  ;;  %v932_v17 = vld [vmem:[%s8054_s26 + $0x38] sm:$0xff]  ;;  %v8092_v18 = vld [vmem:[%s8054_s26] sm:$0xff] }
  0x21   : > { %7558 = vrot.lane.b32.xlu0 %v8068_v8, %s7939_s27  ;;  %v934_v19 = vld [vmem:[%s8054_s26 + $0x58] sm:$0x1]  ;;  %v8096_v20 = vpack.i.bf16 %v932_v17, %v8088_v16  ;;  %v8100_v21 = vpack.i.bf16 %v8088_v16, %v930_v11  ;;  %v939_v23 = vld [vmem:[%s8054_s26 + $0x80] sm:$0x1]  ;;  %v940_v24 = vld [vmem:[%s8054_s26 + $0x88] sm:$0x1] }
  0x22   : > { %v7577_v22 = vpack.i.bf16 %v934_v19, %v8092_v18  ;;  %v8108_v25 = vld [vmem:[%s8054_s26 + $0x40] sm:$0xff]  ;;  %v7592_v26 = vpack.i.bf16 %v940_v24, %v939_v23  ;;  %v941_v29 = vld [vmem:[%s8054_s26 + $0x90] sm:$0x1]  ;;  %v942_v30 = vld [vmem:[%s8054_s26 + $0x98] sm:$0x1] }
  0x23   : > { %v8119_v27 = vpack.i.bf16 %v8108_v25, %v932_v17  ;;  %v8122_v28 = vld [vmem:[%s8113_s10] sm:$0xff]  ;;  %v8132_v32 = vld [vmem:[%s8113_s10 + $0x8] sm:$0xff]  ;;  %v7597_v34 = vpack.i.bf16 %v942_v30, %v941_v29  ;;  %v284_v36 = vld [vmem:[%s8054_s26 + $0x58] sm:$0x1] }
  0x24   : > { %7573 = vrot.lane.b32.xlu1 %v7572_v12, %s7939_s27  ;;  %v8129_v31 = vcombine.high %v8122_v28, %v8122_v28  ;;  %v285_v35 = vld [vmem:[%s8054_s26 + $0x60] sm:$0x1]  ;;  %v287_v37 = vld [vmem:[%s8054_s26 + $0x70] sm:$0x1]  ;;  %v7130_v39 = vpack.c.bf16 %v284_v36, %v8092_v18  ;;  %v286_v41 = vld [vmem:[%s8054_s26 + $0x68] sm:$0x1]  ;;  %v8153_v46 = vcombine.high %v8132_v32, %v8132_v32 }
  0x25   : > { %7563 = vrot.lane.b32.xlu0 %v8085_v15, %s7939_s27  ;;  %v7127_v38 = vpack.c.bf16 %v285_v35, %v8059_v3  ;;  %v7133_v40 = vpack.c.bf16 %v287_v37, %v928_v9  ;;  %v289_v42 = vld [vmem:[%s8054_s26 + $0x80] sm:$0x1]  ;;  %v288_v43 = vld [vmem:[%s8054_s26 + $0x78] sm:$0x1]  ;;  %v7136_v44 = vpack.c.bf16 %v286_v41, %v8062_v5  ;;  %v291_v47 = vld [vmem:[%s8054_s26 + $0x90] sm:$0x1] }
  0x26   : > { %v7139_v45 = vpack.c.bf16 %v289_v42, %v930_v11  ;;  %v290_v48 = vld [vmem:[%s8054_s26 + $0x88] sm:$0x1]  ;;  %v7142_v50 = vpack.c.bf16 %v288_v43, %v8072_v10  ;;  %v7145_v51 = vpack.c.bf16 %v291_v47, %v932_v17  ;;  %v8181_v53 = vld [vmem:[%s8113_s10 + $0x10] sm:$0xff]  ;;  %v8199_v55 = vld [vmem:[%s8113_s10 + $0x18] sm:$0xff] }
  0x27   : > { %7129 = vmatprep.subr.msk.bf16.mxu0 %vm8134_vm2, %v7127_v38  ;;  %7135 = vmatprep.subr.msk.bf16.mxu1 %vm8134_vm2, %v7133_v40  ;;  %v7148_v52 = vpack.c.bf16 %v290_v48, %v8088_v16  ;;  %v8194_v54 = vcombine.high %v8181_v53, %v8181_v53  ;;  %v8219_v57 = vcombine.high %v8199_v55, %v8199_v55  ;;  %v924_v58 = vld [vmem:[%s8113_s10 + $0x20] sm:$0xf]  ;;  %v1692_v59 = vld [vmem:[%s8054_s26 + $0x70] sm:$0x1]  ;;  %v1693_v60 = vld [vmem:[%s8054_s26 + $0x78] sm:$0x1] }
  0x28   : > { %7583 = vrot.lane.b32.xlu1 %v8100_v21, %s7939_s27  ;;  %7132 = vmatpush1.bf16.msk.msra.mxu0 %vm8134_vm2, %v7130_v39  ;;  %v1690_v61 = vld [vmem:[%s8054_s26 + $0x60] sm:$0x1]  ;;  %v1691_v62 = vld [vmem:[%s8054_s26 + $0x68] sm:$0x1]  ;;  %v7617_v63 = vpack.i.bf16 %v1693_v60, %v1692_v59  ;;  %v1689_v2 = vld [vmem:[%s8054_s26 + $0x58] sm:$0x1] }
  0x29   : > { %7578 = vrot.lane.b32.xlu0 %v7577_v22, %s7939_s27  ;;  %7141 = vmatprep.subr.msk.bf16.mxu0 %vm8134_vm2, %v7139_v45  ;;  %v7612_v1 = vpack.i.bf16 %v1691_v62, %v1690_v61  ;;  %v7622_v4 = vpack.i.bf16 %v1689_v2, %v8092_v18  ;;  %v1694_v6 = vld [vmem:[%s8054_s26 + $0x80] sm:$0x1]  ;;  %v1695_v7 = vld [vmem:[%s8054_s26 + $0x88] sm:$0x1]  ;;  %v1696_v9 = vld [vmem:[%s8054_s26 + $0x90] sm:$0x1] }
  0x2a   : > { %7138 = vmatpush1.bf16.msk.msra.mxu1 %vm8134_vm2, %v7136_v44  ;;  %v1697_v10 = vld [vmem:[%s8054_s26 + $0x98] sm:$0x1]  ;;  %v1679_v12 = vld [vmem:[%s8113_s10 + $0x20] sm:$0xf]  ;;  %v3099_v18 = vld [vmem:[%s8054_s26 + $0x68] sm:$0x1] }
  0x2b   : > { %6891 = vmatmul.mubr.msk.f32.vlgmr.msra.gmra.mrb[0].mxu0 %vm294_vm3, %v293_v49  ;;  %7147 = vmatprep.subr.msk.bf16.mxu1 %vm8134_vm2, %v7145_v51  ;;  %v7642_v11 = vpack.i.bf16 %v1697_v10, %v1696_v9  ;;  %v3101_v16 = vld [vmem:[%s8054_s26 + $0x78] sm:$0x1]  ;;  %v3102_v17 = vld [vmem:[%s8054_s26 + $0x80] sm:$0x1]  ;;  %v3100_v19 = vld [vmem:[%s8054_s26 + $0x70] sm:$0x1] }
  0x2c   : > { %7593 = vrot.lane.b32.xlu1 %v7592_v26, %s7939_s27  ;;  %7144 = vmatpush1.bf16.msk.msra.mxu0 %vm8134_vm2, %v7142_v50  ;;  %v7662_v22 = vpack.i.bf16 %v3102_v17, %v3101_v16  ;;  %v7657_v23 = vpack.i.bf16 %v3100_v19, %v3099_v18  ;;  %v3098_v24 = vld [vmem:[%s8054_s26 + $0x60] sm:$0x1]  ;;  %v3104_v29 = vld [vmem:[%s8054_s26 + $0x90] sm:$0x1]  ;;  %v8300_v30 = vld [vmem:[%s8054_s26 + $0x48] sm:$0xff] }
  0x2d   : > { %7588 = vrot.lane.b32.xlu0 %v8119_v27, %s7939_s27  ;;  %6894 = vmatmul.mubr.msk.f32.vlgmr.msra.gmra.mrb[0].mxu1 %vm294_vm3, %v293_v49  ;;  %v7667_v26 = vpack.i.bf16 %v3098_v24, %v8059_v3  ;;  %v8310_v35 = vld [vmem:[%s8113_s10 + $0x4] sm:$0xff]  ;;  %v3105_v36 = vld [vmem:[%s8054_s26 + $0x98] sm:$0x1]  ;;  %v3106_v37 = vld [vmem:[%s8054_s26 + $0xa0] sm:$0x1] }
  0x2e   : > { %529 = vmatprep.mubr.f32.mxu0 %v7938_v0  ;;  %7150 = vmatpush1.bf16.msk.msra.mxu1 %vm8134_vm2, %v7148_v52  ;;  %v8317_v38 = vcombine.high %v8310_v35, %v8310_v35  ;;  %v7687_v39 = vpack.i.bf16 %v3106_v37, %v3105_v36  ;;  %v8322_v40 = vld [vmem:[%s8113_s10 + $0xc] sm:$0xff]  ;;  %v8336_v41 = vld [vmem:[%s8113_s10 + $0x14] sm:$0xff]  ;;  %v8347_v43 = vld [vmem:[%s8113_s10 + $0x1c] sm:$0xff] }
  0x2f   : > { %6897 = vmatmul.mubr.msk.f32.vlgmr.msra.gmra.mrb[2].mxu0 %vm294_vm3, %v293_v49  ;;  %600 = vmatprep.mubr.f32.mxu1 %v7938_v0  ;;  %v8342_v42 = vcombine.high %v8336_v41, %v8336_v41  ;;  %v8355_v44 = vcombine.high %v8347_v43, %v8347_v43  ;;  %v3088_v45 = vld [vmem:[%s8113_s10 + $0x24] sm:$0xf]  ;;  %v3855_v47 = vld [vmem:[%s8054_s26 + $0x78] sm:$0x1]  ;;  %v3856_v48 = vld [vmem:[%s8054_s26 + $0x80] sm:$0x1] }
  0x30   : > { %1340 = vrot.lane.b32.xlu1 %v8129_v31, %s7939_s27  ;;  %6901 = vmatprep.subr.msk.mxu0 %vm619_vm4, %v8129_v31  ;;  %v3854_v50 = vld [vmem:[%s8054_s26 + $0x70] sm:$0x1]  ;;  %v7707_v51 = vpack.i.bf16 %v3856_v48, %v3855_v47  ;;  %v3857_v59 = vld [vmem:[%s8054_s26 + $0x88] sm:$0x1] }
  0x31   : > { %7598 = vrot.lane.b32.xlu0 %v7597_v34, %s7939_s27  ;;  %6900 = vmatmul.mubr.msk.f32.vlgmr.msra.gmra.mrb[2].mxu1 %vm294_vm3, %v293_v49  ;;  %v8307_v34 = vpack.i.bf16 %v8300_v30, %v8108_v25  ;;  %v8328_v25 = vcombine.high %v8322_v40, %v8322_v40  ;;  %v3853_v49 = vld [vmem:[%s8054_s26 + $0x68] sm:$0x1]  ;;  %v3858_v60 = vld [vmem:[%s8054_s26 + $0x90] sm:$0x1] }
  0x32   : > { %6902 = vmatpush1.msk.msra.mxu0 %vm619_vm4, %v8122_v28  ;;  %700 = vmatprep.mubr.f32.mxu0 %v7938_v0  ;;  %v7702_v52 = vpack.i.bf16 %v3854_v50, %v3853_v49 }
  0x33   : > { %6907 = vmatprep.subr.msk.mxu0 %vm619_vm4, %v8194_v54  ;;  %6903 = vmatmul.mubr.msk.f32.vlgmr.msra.gmra.mrb[0].mxu0 %vm615_vm5, %v292_v56 }
  0x34   : > { %1344 = vrot.lane.b32.xlu1 %v8153_v46, %s7939_s27  ;;  %6904 = vmatprep.subr.msk.mxu1 %vm619_vm4, %v8153_v46 }
  0x35   : > { %1342 = vrot.lane.b32.xlu0 %v8132_v32, %s7939_s27  ;;  %6908 = vmatpush1.msk.msra.mxu0 %vm619_vm4, %v8181_v53 }
  0x36   : > { %771 = vmatprep.mubr.f32.mxu1 %v7938_v0  ;;  %6905 = vmatpush1.msk.msra.mxu1 %vm619_vm4, %v8132_v32 }
  0x37   : > { %6906 = vmatmul.mubr.msk.f32.vlgmr.msra.gmra.mrb[0].mxu1 %vm615_vm5, %v292_v56  ;;  %6910 = vmatprep.subr.msk.mxu1 %vm619_vm4, %v8219_v57 }
  0x38   : > { %1338 = vrot.lane.b32.xlu1 %v8122_v28, %s7939_s27  ;;  %6911 = vmatpush1.msk.msra.mxu1 %vm619_vm4, %v8199_v55 }
  0x39   : > { %1346 = vrot.lane.b32.xlu0 %v8181_v53, %s7939_s27  ;;  %913 = vmatprep.mubr.f32.mxu1 %v7938_v0 }
  0x3a   : > { %842 = vmatprep.mubr.f32.mxu0 %v7938_v0 }
  0x3b   : > { %6912 = vmatmul.mubr.msk.f32.vlgmr.msra.gmra.mrb[2].mxu1 %vm615_vm5, %v292_v56  ;;  %6909 = vmatmul.mubr.msk.f32.vlgmr.msra.gmra.mrb[2].mxu0 %vm615_vm5, %v292_v56  ;;  %v3852_v56 = vld [vmem:[%s8054_s26 + $0x60] sm:$0x1] }
  0x3c   : > { %1350 = vrot.lane.b32.xlu1 %v8199_v55, %s7939_s27  ;;  %1109 = vmatprep.mubr.f32.mxu0 %v7938_v0 }
  0x3d   : > { %1348 = vrot.lane.b32.xlu0 %v8194_v54, %s7939_s27  ;;  %1180 = vmatprep.mubr.f32.mxu1 %v7938_v0 }
  0x40   : > { %1354 = vrot.lane.b32.xlu1 %v924_v58, %s7939_s27  ;;  %v7712_v58 = vpack.i.bf16 %v3852_v56, %v8059_v3 }
  0x41   : > { %1352 = vrot.lane.b32.xlu0 %v8219_v57, %s7939_s27 }
  0x44   : > { %7608 = vrot.lane.b32.xlu1 %v8085_v15, %s7941_s16 }
  0x45   : > { %7603 = vrot.lane.b32.xlu0 %v8068_v8, %s7941_s16  ;;  %v7637_v8 = vpack.i.bf16 %v1695_v7, %v1694_v6  ;;  %v3859_v7 = vld [vmem:[%s8054_s26 + $0x98] sm:$0x1] }
  0x48   : > { %7618 = vrot.lane.b32.xlu1 %v7617_v63, %s7941_s16 }
  0x49   : > { %7613 = vrot.lane.b32.xlu0 %v7612_v1, %s7941_s16 }
  0x4c   : > { %7628 = vrot.lane.b32.xlu1 %v8100_v21, %s7941_s16 }
  0x4d   : > { %7623 = vrot.lane.b32.xlu0 %v7622_v4, %s7941_s16 }
  0x50   : > { %7638 = vrot.lane.b32.xlu1 %v7637_v8, %s7941_s16  ;;  %v3860_v8 = vld [vmem:[%s8054_s26 + $0xa0] sm:$0x1] }
  0x51   : > { %7633 = vrot.lane.b32.xlu0 %v8119_v27, %s7941_s16  ;;  %v7732_v19 = vpack.i.bf16 %v3860_v8, %v3859_v7 }
  0x54   : > { %2095 = vrot.lane.b32.xlu1 %v8129_v31, %s7941_s16 }
  0x55   : > { %7643 = vrot.lane.b32.xlu0 %v7642_v11, %s7941_s16 }
  0x58   : > { %2099 = vrot.lane.b32.xlu1 %v8153_v46, %s7941_s16 }
  0x59   : > { %2097 = vrot.lane.b32.xlu0 %v8132_v32, %s7941_s16 }
  0x5c   : > { %2093 = vrot.lane.b32.xlu1 %v8122_v28, %s7941_s16  ;;  %v3103_v28 = vld [vmem:[%s8054_s26 + $0x88] sm:$0x1] }
  0x5d   : > { %2101 = vrot.lane.b32.xlu0 %v8181_v53, %s7941_s16  ;;  %v7682_v31 = vpack.i.bf16 %v3104_v29, %v3103_v28 }
  0x60   : > { %2105 = vrot.lane.b32.xlu1 %v8199_v55, %s7941_s16 }
  0x61   : > { %2103 = vrot.lane.b32.xlu0 %v8194_v54, %s7941_s16 }
  0x64   : > { %2109 = vrot.lane.b32.xlu1 %v1679_v12, %s7941_s16 }
  0x65   : > { %2107 = vrot.lane.b32.xlu0 %v8219_v57, %s7941_s16 }
  0x68   : > { %7653 = vrot.lane.b32.xlu1 %v8080_v14, %s7939_s27 }
  0x69   : > { %7648 = vrot.lane.b32.xlu0 %v8077_v13, %s7939_s27 }
  0x6c   : > { %7663 = vrot.lane.b32.xlu1 %v7662_v22, %s7939_s27 }
  0x6d   : > { %7658 = vrot.lane.b32.xlu0 %v7657_v23, %s7939_s27 }
  0x70   : > { %7673 = vrot.lane.b32.xlu1 %v8096_v20, %s7939_s27 }
  0x71   : > { %7668 = vrot.lane.b32.xlu0 %v7667_v26, %s7939_s27 }
  0x74   : > { %7683 = vrot.lane.b32.xlu1 %v7682_v31, %s7939_s27 }
  0x75   : > { %7678 = vrot.lane.b32.xlu0 %v8307_v34, %s7939_s27 }
  0x78   : > { %3503 = vrot.lane.b32.xlu1 %v8317_v38, %s7939_s27 }
  0x79   : > { %7688 = vrot.lane.b32.xlu0 %v7687_v39, %s7939_s27 }
  0x7c   : > { %3507 = vrot.lane.b32.xlu1 %v8328_v25, %s7939_s27 }
  0x7d   : > { %3505 = vrot.lane.b32.xlu0 %v8322_v40, %s7939_s27 }
  0x80   : > { %3501 = vrot.lane.b32.xlu1 %v8310_v35, %s7939_s27 }
  0x81   : > { %3509 = vrot.lane.b32.xlu0 %v8336_v41, %s7939_s27 }
  0x84   : > { %3513 = vrot.lane.b32.xlu1 %v8347_v43, %s7939_s27 }
  0x85   : > { %3511 = vrot.lane.b32.xlu0 %v8342_v42, %s7939_s27 }
  0x88   : > { %3517 = vrot.lane.b32.xlu1 %v3088_v45, %s7939_s27 }
  0x89   : > { %3515 = vrot.lane.b32.xlu0 %v8355_v44, %s7939_s27 }
  0x8c   : > { %7698 = vrot.lane.b32.xlu1 %v8080_v14, %s7941_s16 }
  0x8d   : > { %7693 = vrot.lane.b32.xlu0 %v8077_v13, %s7941_s16  ;;  %v7727_v13 = vpack.i.bf16 %v3858_v60, %v3857_v59 }
  0x90   : > { %7708 = vrot.lane.b32.xlu1 %v7707_v51, %s7941_s16 }
  0x91   : > { %7703 = vrot.lane.b32.xlu0 %v7702_v52, %s7941_s16 }
  0x92   : > { %v7569_v61 = vpop.permute.xlu1 %7568 }
  0x93   : > { %v7571_v62 = vunpack.i.h.bf16 %v7569_v61  ;;  %v7570_v14 = vunpack.i.l.bf16 %v7569_v61  ;;  %v7559_v63 = vpop.permute.xlu0 %7558  ;;  %v6914_v61 = vld [vmem:[%s9209_s3 + $0x8] sm:$0xff] }
  0x94   : > { %v7561_v1 = vunpack.i.h.bf16 %v7559_v63  ;;  %v7560_v2 = vunpack.i.l.bf16 %v7559_v63  ;;  %7718 = vrot.lane.b32.xlu1 %v8096_v20, %s7941_s16 }
  0x95   : > { %v1011_v4 = vsel %vm1001_vm6, %v7570_v14, %v7571_v62  ;;  %7713 = vrot.lane.b32.xlu0 %v7712_v58, %s7941_s16 }
  0x96   : > { %v1003_v3 = vsel %vm1001_vm6, %v7560_v2, %v7561_v1  ;;  %v7574_v6 = vpop.permute.xlu1 %7573 }
  0x97   : > { %v7576_v9 = vunpack.i.h.bf16 %v7574_v6  ;;  %v7575_v10 = vunpack.i.l.bf16 %v7574_v6  ;;  %v7564_v11 = vpop.permute.xlu0 %7563  ;;  %v7151_v12 = vpack.c.bf16 %v1011_v4, %v1003_v3 }
  0x98   : > { %v7566_v16 = vunpack.i.h.bf16 %v7564_v11  ;;  %v7565_v17 = vunpack.i.l.bf16 %v7564_v11  ;;  %7728 = vrot.lane.b32.xlu1 %v7727_v13, %s7941_s16 }
  0x99   : > { %v1012_v20 = vsel %vm1001_vm6, %v7571_v62, %v7575_v10  ;;  %v1013_v18 = vsel %vm1001_vm6, %v7575_v10, %v7576_v9  ;;  %7723 = vrot.lane.b32.xlu0 %v8307_v34, %s7941_s16  ;;  %7153 = vmatprep.subr.msk.bf16.mxu0 %vm8134_vm2, %v7151_v12  ;;  %v3842_v12 = vld [vmem:[%s8113_s10 + $0x24] sm:$0xf] }
  0x9a   : > { %v1004_v22 = vsel %vm1001_vm6, %v7561_v1, %v7565_v17  ;;  %v1005_v23 = vsel %vm1001_vm6, %v7565_v17, %v7566_v16  ;;  %v7584_v24 = vpop.permute.xlu1 %7583 }
  0x9b   : > { %v7160_v26 = vpack.c.bf16 %v1012_v20, %v1004_v22  ;;  %v7579_v28 = vpop.permute.xlu0 %7578  ;;  %v7157_v29 = vpack.c.bf16 %v1013_v18, %v1005_v23  ;;  %v7585_v31 = vunpack.i.l.bf16 %v7584_v24  ;;  %v7586_v39 = vunpack.i.h.bf16 %v7584_v24  ;;  %v6913_v18 = vld [vmem:[%s9208_s2 + $0x8] sm:$0xff] }
  0x9c   : > { %v7581_v36 = vunpack.i.h.bf16 %v7579_v28  ;;  %v7580_v37 = vunpack.i.l.bf16 %v7579_v28  ;;  %4257 = vrot.lane.b32.xlu1 %v8317_v38, %s7941_s16  ;;  %v5264_v22 = vld [vmem:[%s8054_s26 + $0x88] sm:$0x1]  ;;  %v5262_v28 = vld [vmem:[%s8054_s26 + $0x78] sm:$0x1] }
  0x9d   : > { %7733 = vrot.lane.b32.xlu0 %v7732_v19, %s7941_s16  ;;  %7159 = vmatprep.subr.msk.bf16.mxu1 %vm8134_vm2, %v7157_v29  ;;  %v1006_v52 = vsel %vm1001_vm6, %v7566_v16, %v7585_v31  ;;  %v1007_v56 = vsel %vm1001_vm6, %v7585_v31, %v7586_v39  ;;  %v5263_v19 = vld [vmem:[%s8054_s26 + $0x80] sm:$0x1] }
  0x9e   : > { %v1010_v34 = vsel %vm1001_vm6, %v7581_v36, %v7570_v14  ;;  %v1002_v45 = vsel %vm1001_vm6, %v7580_v37, %v7560_v2  ;;  %7162 = vmatpush1.bf16.msk.msra.mxu1 %vm8134_vm2, %v7160_v26  ;;  %v7594_v47 = vpop.permute.xlu1 %7593  ;;  %v5261_v26 = vld [vmem:[%s8054_s26 + $0x70] sm:$0x1]  ;;  %v7752_v36 = vpack.i.bf16 %v5264_v22, %v5263_v19 }
  0x9f   : > { %v7154_v48 = vpack.c.bf16 %v1010_v34, %v1002_v45  ;;  %v7596_v49 = vunpack.i.h.bf16 %v7594_v47  ;;  %v7595_v50 = vunpack.i.l.bf16 %v7594_v47  ;;  %v7589_v51 = vpop.permute.xlu0 %7588  ;;  %v7747_v37 = vpack.i.bf16 %v5262_v28, %v5261_v26  ;;  %v5260_v34 = vld [vmem:[%s8054_s26 + $0x68] sm:$0x1] }
  0xa0   : > { %4261 = vrot.lane.b32.xlu1 %v8328_v25, %s7941_s16  ;;  %v7590_v60 = vunpack.i.l.bf16 %v7589_v51  ;;  %v7591_v14 = vunpack.i.h.bf16 %v7589_v51  ;;  %v7757_v47 = vpack.i.bf16 %v5260_v34, %v8062_v5 }
  0xa1   : > { %v1014_v58 = vsel %vm1001_vm6, %v7576_v9, %v7595_v50  ;;  %v1015_v59 = vsel %vm1001_vm6, %v7595_v50, %v7596_v49  ;;  %4259 = vrot.lane.b32.xlu0 %v8322_v40, %s7941_s16  ;;  %7156 = vmatpush1.bf16.msk.msra.mxu0 %vm8134_vm2, %v7154_v48  ;;  %v5259_v48 = vld [vmem:[%s8054_s26 + $0x50] sm:$0xff]  ;;  %v5266_v50 = vld [vmem:[%s8054_s26 + $0x98] sm:$0x1] }
  0xa2   : > { %v7166_v62 = vpack.c.bf16 %v1014_v58, %v1006_v52  ;;  %v1341_v25 = vpop.permute.xlu1 %1340  ;;  %v7163_v63 = vpack.c.bf16 %v1015_v59, %v1007_v56  ;;  %6920 = vmatmul.mubr.msk.f32.vlgmr.msra.gmra.mrb[0].mxu1 %vm294_vm3, %v6914_v61  ;;  %v1008_v40 = vsel %vm1001_vm6, %v7586_v39, %v7590_v60  ;;  %v1009_v4 = vsel %vm1001_vm6, %v7590_v60, %v7591_v14  ;;  %v5267_v14 = vld [vmem:[%s8054_s26 + $0xa0] sm:$0x1] }
  0xa3   : > { %v7599_v1 = vpop.permute.xlu0 %7598  ;;  %1322 = vmatprep.mubr.f32.mxu1 %v7938_v0  ;;  %v8489_v56 = vpack.i.bf16 %v5259_v48, %v8300_v30 }
  0xa4   : > { %v7601_v2 = vunpack.i.h.bf16 %v7599_v1  ;;  %v7600_v13 = vunpack.i.l.bf16 %v7599_v1  ;;  %4255 = vrot.lane.b32.xlu1 %v8310_v35, %s7941_s16  ;;  %7165 = vmatprep.subr.msk.bf16.mxu0 %vm8134_vm2, %v7163_v63 }
  0xa5   : > { %4263 = vrot.lane.b32.xlu0 %v8336_v41, %s7941_s16  ;;  %6917 = vmatmul.mubr.msk.f32.vlgmr.msra.gmra.mrb[0].mxu0 %vm294_vm3, %v6914_v61 }
  0xa6   : > { %v1016_v3 = vsel %vm1001_vm6, %v7596_v49, %v7600_v13  ;;  %v1017_v6 = vsel %vm1001_vm6, %v7600_v13, %v7601_v2  ;;  %7168 = vmatpush1.bf16.msk.msra.mxu0 %vm8134_vm2, %v7166_v62  ;;  %v1345_v7 = vpop.permute.xlu1 %1344  ;;  %1251 = vmatprep.mubr.f32.mxu0 %v7938_v0  ;;  %v5265_v49 = vld [vmem:[%s8054_s26 + $0x90] sm:$0x1] }
  0xa7   : > { %v7172_v8 = vpack.c.bf16 %v1016_v3, %v1008_v40  ;;  %v1343_v9 = vpop.permute.xlu0 %1342  ;;  %v7169_v10 = vpack.c.bf16 %v1017_v6, %v1009_v4  ;;  %v7772_v5 = vpack.i.bf16 %v5266_v50, %v5265_v49  ;;  %v8539_v49 = vld [vmem:[%s8113_s10 + $0x20] sm:$0xff] }
  0xa8   : > { %4267 = vrot.lane.b32.xlu1 %v8347_v43, %s7941_s16  ;;  %v1357_v11 = vsel %vm1001_vm6, %v1341_v25, %v1343_v9  ;;  %v1358_v23 = vsel %vm1001_vm6, %v1343_v9, %v1345_v7 }
  0xa9   : > { %4265 = vrot.lane.b32.xlu0 %v8342_v42, %s7941_s16  ;;  %7171 = vmatprep.subr.msk.bf16.mxu1 %vm8134_vm2, %v7169_v10 }
  0xaa   : > { %6927 = vmatprep.subr.msk.mxu0 %vm619_vm4, %v1357_v11  ;;  %7174 = vmatpush1.bf16.msk.msra.mxu1 %vm8134_vm2, %v7172_v8  ;;  %v1339_v16 = vpop.permute.xlu1 %1338 }
  0xab   : > { %v1347_v17 = vpop.permute.xlu0 %1346  ;;  %v1356_v43 = vsel %vm1001_vm6, %v1339_v16, %v1341_v25  ;;  %6923 = vmatmul.mubr.msk.f32.vlgmr.msra.gmra.mrb[2].mxu0 %vm294_vm3, %v6914_v61  ;;  %v5268_v25 = vld [vmem:[%s8054_s26 + $0xa8] sm:$0x1] }
  0xac   : > { %v1359_v20 = vsel %vm1001_vm6, %v1345_v7, %v1347_v17  ;;  %4271 = vrot.lane.b32.xlu1 %v3842_v12, %s7941_s16  ;;  %6928 = vmatpush1.msk.msra.mxu0 %vm619_vm4, %v1356_v43  ;;  %v7777_v3 = vpack.i.bf16 %v5268_v25, %v5267_v14  ;;  %v8563_v14 = vld [vmem:[%s8054_s26 + $0x30] sm:$0xff]  ;;  %v8569_v25 = vld [vmem:[%s8054_s26 + $0x18] sm:$0xff] }
  0xad   : > { %4269 = vrot.lane.b32.xlu0 %v8355_v44, %s7941_s16  ;;  %6930 = vmatprep.subr.msk.mxu1 %vm619_vm4, %v1359_v20 }
  0xae   : > { %6926 = vmatmul.mubr.msk.f32.vlgmr.msra.gmra.mrb[2].mxu1 %vm294_vm3, %v6914_v61  ;;  %v1351_v24 = vpop.permute.xlu1 %1350  ;;  %1447 = vmatprep.mubr.f32.mxu0 %v7938_v0 }
  0xaf   : > { %6931 = vmatpush1.msk.msra.mxu1 %vm619_vm4, %v1358_v23  ;;  %v1349_v29 = vpop.permute.xlu0 %1348  ;;  %6929 = vmatmul.mubr.msk.f32.vlgmr.msra.gmra.mrb[0].mxu0 %vm615_vm5, %v6913_v18 }
  0xb0   : > { %v1360_v44 = vsel %vm1001_vm6, %v1347_v17, %v1349_v29  ;;  %v1361_v31 = vsel %vm1001_vm6, %v1349_v29, %v1351_v24  ;;  %7743 = vrot.lane.b32.xlu1 %v8100_v21, %s7939_s27  ;;  %1518 = vmatprep.mubr.f32.mxu1 %v7938_v0 }
  0xb1   : > { %7738 = vrot.lane.b32.xlu0 %v8085_v15, %s7939_s27  ;;  %6933 = vmatprep.subr.msk.mxu0 %vm619_vm4, %v1361_v31 }
  0xb2   : > { %6934 = vmatpush1.msk.msra.mxu0 %vm619_vm4, %v1360_v44  ;;  %v1355_v39 = vpop.permute.xlu1 %1354  ;;  %6932 = vmatmul.mubr.msk.f32.vlgmr.msra.gmra.mrb[0].mxu1 %vm615_vm5, %v6913_v18 }
  0xb3   : > { %v1353_v45 = vpop.permute.xlu0 %1352  ;;  %1660 = vmatprep.mubr.f32.mxu1 %v7938_v0  ;;  %1589 = vmatprep.mubr.f32.mxu0 %v7938_v0 }
  0xb4   : > { %v1362_v21 = vsel %vm1001_vm6, %v1351_v24, %v1353_v45  ;;  %v1363_v15 = vsel %vm1001_vm6, %v1353_v45, %v1355_v39  ;;  %7753 = vrot.lane.b32.xlu1 %v7752_v36, %s7939_s27  ;;  %6935 = vmatmul.mubr.msk.f32.vlgmr.msra.gmra.mrb[2].mxu0 %vm615_vm5, %v6913_v18  ;;  %v6940_v39 = vld [vmem:[%s9209_s3 + $0x10] sm:$0xff] }
  0xb5   : > { %7748 = vrot.lane.b32.xlu0 %v7747_v37, %s7939_s27  ;;  %6936 = vmatprep.subr.msk.mxu1 %vm619_vm4, %v1363_v15 }
  0xb6   : > { %6937 = vmatpush1.msk.msra.mxu1 %vm619_vm4, %v1362_v21  ;;  %v7609_v51 = vpop.permute.xlu1 %7608  ;;  %1864 = vmatprep.mubr.f32.mxu0 %v7938_v0 }
  0xb7   : > { %v7604_v52 = vpop.permute.xlu0 %7603  ;;  %6938 = vmatmul.mubr.msk.f32.vlgmr.msra.gmra.mrb[2].mxu1 %vm615_vm5, %v6913_v18  ;;  %v7611_v60 = vunpack.i.h.bf16 %v7609_v51  ;;  %v7610_v61 = vunpack.i.l.bf16 %v7609_v51 }
  0xb8   : > { %7763 = vrot.lane.b32.xlu1 %v8119_v27, %s7939_s27  ;;  %1935 = vmatprep.mubr.f32.mxu1 %v7938_v0  ;;  %v7606_v58 = vunpack.i.h.bf16 %v7604_v52  ;;  %v7605_v59 = vunpack.i.l.bf16 %v7604_v52 }
  0xb9   : > { %7758 = vrot.lane.b32.xlu0 %v7757_v47, %s7939_s27  ;;  %v1760_v40 = vsel %vm1756_vm7, %v7610_v61, %v7611_v60 }
  0xba   : > { %v7619_v62 = vpop.permute.xlu1 %7618  ;;  %v1758_v30 = vsel %vm1756_vm7, %v7605_v59, %v7606_v58  ;;  %v1759_v6 = vsel %vm1756_vm7, %v7606_v58, %v7610_v61  ;;  %v5250_v61 = vld [vmem:[%s8113_s10 + $0x28] sm:$0xf] }
  0xbb   : > { %v7614_v63 = vpop.permute.xlu0 %7613  ;;  %v7621_v1 = vunpack.i.h.bf16 %v7619_v62  ;;  %v7620_v2 = vunpack.i.l.bf16 %v7619_v62  ;;  %v8560_v62 = vld [vmem:[%s8054_s26 + $0x28] sm:$0xff] }
  0xbc   : > { %v7616_v27 = vunpack.i.h.bf16 %v7614_v63  ;;  %v7615_v13 = vunpack.i.l.bf16 %v7614_v63  ;;  %7773 = vrot.lane.b32.xlu1 %v7772_v5, %s7939_s27  ;;  %v8572_v63 = vld [vmem:[%s8054_s26 + $0x20] sm:$0xff] }
  0xbd   : > { %v1768_v4 = vsel %vm1756_vm7, %v7620_v2, %v7621_v1  ;;  %7768 = vrot.lane.b32.xlu0 %v8489_v56, %s7939_s27 }
  0xbe   : > { %v1766_v7 = vsel %vm1756_vm7, %v7615_v13, %v7616_v27  ;;  %v1767_v8 = vsel %vm1756_vm7, %v7616_v27, %v7620_v2  ;;  %v7181_v9 = vpack.c.bf16 %v1768_v4, %v1760_v40  ;;  %v7629_v10 = vpop.permute.xlu1 %7628  ;;  %v8587_v40 = vld [vmem:[%s8054_s26 + $0x10] sm:$0xff]  ;;  %v2443_v4 = vld [vmem:[%s8054_s26 + $0x68] sm:$0x1] }
  0xbf   : > { %v7175_v11 = vpack.c.bf16 %v1766_v7, %v1758_v30  ;;  %v7184_v12 = vpack.c.bf16 %v1767_v8, %v1759_v6  ;;  %v7624_v16 = vpop.permute.xlu0 %7623  ;;  %v7630_v20 = vunpack.i.l.bf16 %v7629_v10  ;;  %v7631_v18 = vunpack.i.h.bf16 %v7629_v10  ;;  %v6017_v6 = vld [vmem:[%s8054_s26 + $0x80] sm:$0x1]  ;;  %v6018_v7 = vld [vmem:[%s8054_s26 + $0x88] sm:$0x1]  ;;  %v6015_v10 = vld [vmem:[%s8054_s26 + $0x70] sm:$0x1] }
  0xc0   : > { %v7626_v17 = vunpack.i.h.bf16 %v7624_v16  ;;  %v7625_v43 = vunpack.i.l.bf16 %v7624_v16  ;;  %5665 = vrot.lane.b32.xlu1 %v8153_v46, %s7939_s27  ;;  %7183 = vmatprep.subr.msk.bf16.mxu1 %vm8134_vm2, %v7181_v9  ;;  %v7787_v30 = vpack.i.bf16 %v8563_v14, %v8560_v62  ;;  %v7199_v16 = vpack.c.bf16 %v2443_v4, %v8587_v40 }
  0xc1   : > { %7778 = vrot.lane.b32.xlu0 %v7777_v3, %s7939_s27  ;;  %7177 = vmatprep.subr.msk.bf16.mxu0 %vm8134_vm2, %v7175_v11  ;;  %v1761_v29 = vsel %vm1756_vm7, %v7611_v60, %v7630_v20  ;;  %v1762_v44 = vsel %vm1756_vm7, %v7630_v20, %v7631_v18  ;;  %v8554_v60 = vcombine.high %v8539_v49, %v8539_v49  ;;  %v6016_v11 = vld [vmem:[%s8054_s26 + $0x78] sm:$0x1] }
  0xc2   : > { %v1757_v19 = vsel %vm1756_vm7, %v7625_v43, %v7605_v59  ;;  %v1765_v22 = vsel %vm1756_vm7, %v7626_v17, %v7615_v13  ;;  %7186 = vmatpush1.bf16.msk.msra.mxu1 %vm8134_vm2, %v7184_v12  ;;  %v7639_v23 = vpop.permute.xlu1 %7638  ;;  %v8582_v13 = vld [vmem:[%s9208_s2 + $0x10] sm:$0xff]  ;;  %v7782_v3 = vpack.i.bf16 %v8572_v63, %v8569_v25  ;;  %v2434_v17 = vld [vmem:[%s8054_s26 + $0x8] sm:$0xff]  ;;  %v2442_v43 = vld [vmem:[%s8054_s26 + $0x60] sm:$0x1] }
  0xc3   : > { %v7178_v24 = vpack.c.bf16 %v1765_v22, %v1757_v19  ;;  %v7634_v26 = vpop.permute.xlu0 %7633  ;;  %v7641_v46 = vunpack.i.h.bf16 %v7639_v23  ;;  %v7640_v28 = vunpack.i.l.bf16 %v7639_v23  ;;  %v7797_v19 = vpack.i.bf16 %v6018_v7, %v6017_v6  ;;  %v2445_v23 = vld [vmem:[%s8054_s26 + $0x78] sm:$0x1]  ;;  %v6022_v6 = vld [vmem:[%s8054_s26 + $0xa8] sm:$0x1] }
  0xc4   : > { %5669 = vrot.lane.b32.xlu1 %v8194_v54, %s7939_s27  ;;  %v7635_v31 = vunpack.i.l.bf16 %v7634_v26  ;;  %v7636_v34 = vunpack.i.h.bf16 %v7634_v26  ;;  %v7792_v22 = vpack.i.bf16 %v6016_v11, %v6015_v10  ;;  %v7202_v26 = vpack.c.bf16 %v2442_v43, %v2434_v17 }
  0xc5   : > { %v1769_v36 = vsel %vm1756_vm7, %v7621_v1, %v7640_v28  ;;  %v1770_v37 = vsel %vm1756_vm7, %v7640_v28, %v7641_v46  ;;  %5667 = vrot.lane.b32.xlu0 %v8181_v53, %s7939_s27  ;;  %7180 = vmatpush1.bf16.msk.msra.mxu0 %vm8134_vm2, %v7178_v24 }
  0xc6   : > { %v7187_v54 = vpack.c.bf16 %v1770_v37, %v1762_v44  ;;  %v7190_v45 = vpack.c.bf16 %v1769_v36, %v1761_v29  ;;  %v2096_v21 = vpop.permute.xlu1 %2095  ;;  %6946 = vmatmul.mubr.msk.f32.vlgmr.msra.gmra.mrb[0].mxu1 %vm294_vm3, %v6940_v39  ;;  %v1763_v53 = vsel %vm1756_vm7, %v7631_v18, %v7635_v31  ;;  %v1764_v50 = vsel %vm1756_vm7, %v7635_v31, %v7636_v34  ;;  %v2447_v29 = vld [vmem:[%s8054_s26 + $0x88] sm:$0x1]  ;;  %v8634_v34 = vld [vmem:[%s8054_s26 + $0x40] sm:$0xff] }
  0xc7   : > { %v7644_v15 = vpop.permute.xlu0 %7643  ;;  %2077 = vmatprep.mubr.f32.mxu1 %v7938_v0  ;;  %v6014_v44 = vld [vmem:[%s8054_s26 + $0x68] sm:$0x1]  ;;  %v7205_v37 = vpack.c.bf16 %v2445_v23, %v8572_v63 }
  0xc8   : > { %v7646_v47 = vunpack.i.h.bf16 %v7644_v15  ;;  %v7645_v48 = vunpack.i.l.bf16 %v7644_v15  ;;  %5663 = vrot.lane.b32.xlu1 %v8132_v32, %s7939_s27  ;;  %7189 = vmatprep.subr.msk.bf16.mxu0 %vm8134_vm2, %v7187_v54  ;;  %v2446_v54 = vld [vmem:[%s8054_s26 + $0x80] sm:$0x1]  ;;  %v6966_v15 = vld [vmem:[%s9209_s3 + $0x18] sm:$0xff] }
  0xc9   : > { %5671 = vrot.lane.b32.xlu0 %v8199_v55, %s7939_s27  ;;  %6943 = vmatmul.mubr.msk.f32.vlgmr.msra.gmra.mrb[0].mxu0 %vm294_vm3, %v6940_v39 }
  0xca   : > { %v1771_v51 = vsel %vm1756_vm7, %v7641_v46, %v7645_v48  ;;  %v1772_v32 = vsel %vm1756_vm7, %v7645_v48, %v7646_v47  ;;  %7192 = vmatpush1.bf16.msk.msra.mxu0 %vm8134_vm2, %v7190_v45  ;;  %v2100_v52 = vpop.permute.xlu1 %2099  ;;  %2006 = vmatprep.mubr.f32.mxu0 %v7938_v0  ;;  %v2444_v46 = vld [vmem:[%s8054_s26 + $0x70] sm:$0x1]  ;;  %v7211_v47 = vpack.c.bf16 %v2447_v29, %v8563_v14 }
  0xcb   : > { %v7193_v55 = vpack.c.bf16 %v1772_v32, %v1764_v50  ;;  %v7196_v5 = vpack.c.bf16 %v1771_v51, %v1763_v53  ;;  %v2098_v58 = vpop.permute.xlu0 %2097  ;;  %v7208_v45 = vpack.c.bf16 %v2444_v46, %v8569_v25  ;;  %v7802_v48 = vpack.i.bf16 %v6014_v44, %v8587_v40  ;;  %v2449_v53 = vld [vmem:[%s8054_s26 + $0x98] sm:$0x1] }
  0xcc   : > { %v2112_v59 = vsel %vm1756_vm7, %v2096_v21, %v2098_v58  ;;  %5675 = vrot.lane.b32.xlu1 %v8539_v49, %s7939_s27  ;;  %v2113_v8 = vsel %vm1756_vm7, %v2098_v58, %v2100_v52  ;;  %v7214_v32 = vpack.c.bf16 %v2446_v54, %v8560_v62  ;;  %v7217_v58 = vpack.c.bf16 %v2449_v53, %v8634_v34 }
  0xcd   : > { %5673 = vrot.lane.b32.xlu0 %v8219_v57, %s7939_s27  ;;  %7195 = vmatprep.subr.msk.bf16.mxu1 %vm8134_vm2, %v7193_v55  ;;  %v6019_v55 = vld [vmem:[%s8054_s26 + $0x90] sm:$0x1] }
  0xce   : > { %6953 = vmatprep.subr.msk.mxu0 %vm619_vm4, %v2112_v59  ;;  %7198 = vmatpush1.bf16.msk.msra.mxu1 %vm8134_vm2, %v7196_v5  ;;  %v2094_v57 = vpop.permute.xlu1 %2093  ;;  %v6020_v5 = vld [vmem:[%s8054_s26 + $0x98] sm:$0x1] }
  0xcf   : > { %v2102_v1 = vpop.permute.xlu0 %2101  ;;  %v2111_v2 = vsel %vm1756_vm7, %v2094_v57, %v2096_v21  ;;  %6949 = vmatmul.mubr.msk.f32.vlgmr.msra.gmra.mrb[2].mxu0 %vm294_vm3, %v6940_v39 }
  0xd0   : > { %v2114_v27 = vsel %vm1756_vm7, %v2100_v52, %v2102_v1  ;;  %5679 = vrot.lane.b32.xlu1 %v5250_v61, %s7939_s27  ;;  %6954 = vmatpush1.msk.msra.mxu0 %vm619_vm4, %v2111_v2  ;;  %v2448_v52 = vld [vmem:[%s8054_s26 + $0x90] sm:$0x1] }
  0xd1   : > { %5677 = vrot.lane.b32.xlu0 %v8554_v60, %s7939_s27  ;;  %6956 = vmatprep.subr.msk.mxu1 %vm619_vm4, %v2114_v27  ;;  %s6777_s27 = scalar_lea.sflag [#allocation3], %s254_s8 }
  0xd2   : > { %6952 = vmatmul.mubr.msk.f32.vlgmr.msra.gmra.mrb[2].mxu1 %vm294_vm3, %v6940_v39  ;;  %v2106_v9 = vpop.permute.xlu1 %2105  ;;  %2202 = vmatprep.mubr.f32.mxu0 %v7938_v0  ;;  %v8631_v39 = vld [vmem:[%s8054_s26 + $0x38] sm:$0xff] }
  0xd3   : > { %6957 = vmatpush1.msk.msra.mxu1 %vm619_vm4, %v2113_v8  ;;  %v2104_v12 = vpop.permute.xlu0 %2103  ;;  %6955 = vmatmul.mubr.msk.f32.vlgmr.msra.gmra.mrb[0].mxu0 %vm615_vm5, %v8582_v13  ;;  %v7807_v51 = vpack.i.bf16 %v8634_v34, %v8631_v39  ;;  %v7220_v61 = vpack.c.bf16 %v2448_v52, %v8631_v39  ;;  %v8698_v8 = vld [vmem:[%s8113_s10 + $0x8] sm:$0xff] }
  0xd4   : > { %v2115_v20 = vsel %vm1756_vm7, %v2102_v1, %v2104_v12  ;;  %v2116_v18 = vsel %vm1756_vm7, %v2104_v12, %v2106_v9  ;;  %7788 = vrot.lane.b32.xlu1 %v7787_v30, %s7941_s16  ;;  %2273 = vmatprep.mubr.f32.mxu1 %v7938_v0  ;;  %v7817_v1 = vpack.i.bf16 %v6020_v5, %v6019_v55 }
  0xd5   : > { %7783 = vrot.lane.b32.xlu0 %v7782_v3, %s7941_s16  ;;  %6959 = vmatprep.subr.msk.mxu0 %vm619_vm4, %v2116_v18  ;;  %v6021_v3 = vld [vmem:[%s8054_s26 + $0xa0] sm:$0x1]  ;;  %v8727_v23 = vcombine.high %v8698_v8, %v8698_v8 }
  0xd6   : > { %6960 = vmatpush1.msk.msra.mxu0 %vm619_vm4, %v2115_v20  ;;  %v2110_v24 = vpop.permute.xlu1 %2109  ;;  %6958 = vmatmul.mubr.msk.f32.vlgmr.msra.gmra.mrb[0].mxu1 %vm615_vm5, %v8582_v13  ;;  %v8714_v20 = vld [vmem:[%s9208_s2 + $0x18] sm:$0xff]  ;;  %v7822_v18 = vpack.i.bf16 %v6022_v6, %v6021_v3 }
  0xd7   : > { %v2108_v28 = vpop.permute.xlu0 %2107  ;;  %2344 = vmatprep.mubr.f32.mxu0 %v7938_v0  ;;  %7201 = vmatprep.subr.msk.bf16.mxu0 %vm8134_vm2, %v7199_v16 }
  0xd8   : > { %v2117_v31 = vsel %vm1756_vm7, %v2106_v9, %v2108_v28  ;;  %v2118_v36 = vsel %vm1756_vm7, %v2108_v28, %v2110_v24  ;;  %6961 = vmatmul.mubr.msk.f32.vlgmr.msra.gmra.mrb[2].mxu0 %vm615_vm5, %v8582_v13  ;;  %7798 = vrot.lane.b32.xlu1 %v7797_v19, %s7941_s16  ;;  %v2433_v19 = vld [vmem:[%s8113_s10 + $0x1c] sm:$0xff] }
  0xd9   : > { %7793 = vrot.lane.b32.xlu0 %v7792_v22, %s7941_s16  ;;  %6962 = vmatprep.subr.msk.mxu1 %vm619_vm4, %v2118_v36 }
  0xda   : > { %7204 = vmatpush1.bf16.msk.msra.mxu0 %vm8134_vm2, %v7202_v26  ;;  %6963 = vmatpush1.msk.msra.mxu1 %vm619_vm4, %v2117_v31  ;;  %v8643_v21 = vpop.permute.xlu1 %7653  ;;  %v8737_v31 = vld [vmem:[%s8113_s10 + $0x10] sm:$0xff] }
  0xdb   : > { %2415 = vmatprep.mubr.f32.mxu1 %v7938_v0  ;;  %v8652_v50 = vpop.permute.xlu0 %7648  ;;  %2545 = vmatprep.mubr.f32.mxu0 %v7938_v0  ;;  %v7656_v22 = vunpack.i.h.bf16 %v8643_v21 }
  0xdc   : > { %6964 = vmatmul.mubr.msk.f32.vlgmr.msra.gmra.mrb[2].mxu1 %vm615_vm5, %v8582_v13  ;;  %7207 = vmatprep.subr.msk.bf16.mxu1 %vm8134_vm2, %v7205_v37  ;;  %v2431_v13 = vld [vmem:[%s8113_s10 + $0xc] sm:$0xff]  ;;  %v7651_v30 = vunpack.i.h.bf16 %v8652_v50  ;;  %v7650_v4 = vunpack.i.l.bf16 %v8652_v50 }
  0xdd   : > { %6969 = vmatmul.mubr.msk.f32.vlgmr.msra.gmra.mrb[0].mxu0 %vm294_vm3, %v6966_v15  ;;  %7210 = vmatpush1.bf16.msk.msra.mxu1 %vm8134_vm2, %v7208_v45  ;;  %v2770_v16 = vcombine.high %v2431_v13, %v2431_v13 }
  0xde   : > { %7213 = vmatprep.subr.msk.bf16.mxu0 %vm8134_vm2, %v7211_v47  ;;  %7803 = vrot.lane.b32.xlu0 %v7802_v48, %s7941_s16  ;;  %v8672_v59 = vpop.permute.xlu1 %7663 }
  0xdf   : > { %7808 = vrot.lane.b32.xlu1 %v7807_v51, %s7941_s16  ;;  %7216 = vmatpush1.bf16.msk.msra.mxu0 %vm8134_vm2, %v7214_v32  ;;  %v8678_v57 = vpop.permute.xlu0 %7658  ;;  %v7666_v10 = vunpack.i.h.bf16 %v8672_v59  ;;  %v7665_v11 = vunpack.i.l.bf16 %v8672_v59 }
  0xe0   : > { %2616 = vmatprep.mubr.f32.mxu1 %v7938_v0  ;;  %v7661_v2 = vunpack.i.h.bf16 %v8678_v57  ;;  %v7660_v27 = vunpack.i.l.bf16 %v8678_v57  ;;  %2687 = vmatprep.mubr.f32.mxu0 %v7938_v0 }
  0xe1   : > { %6972 = vmatmul.mubr.msk.f32.vlgmr.msra.gmra.mrb[0].mxu1 %vm294_vm3, %v6966_v15  ;;  %7219 = vmatprep.subr.msk.bf16.mxu1 %vm8134_vm2, %v7217_v58  ;;  %v3176_v46 = vsel %vm1001_vm6, %v7665_v11, %v7666_v10 }
  0xe2   : > { %6975 = vmatmul.mubr.msk.f32.vlgmr.msra.gmra.mrb[2].mxu0 %vm294_vm3, %v6966_v15  ;;  %7222 = vmatpush1.bf16.msk.msra.mxu1 %vm8134_vm2, %v7220_v61  ;;  %v8695_v7 = vpop.permute.xlu1 %7673  ;;  %v3174_v9 = vsel %vm1001_vm6, %v7660_v27, %v7661_v2  ;;  %v3175_v52 = vsel %vm1001_vm6, %v7661_v2, %v7665_v11  ;;  %v8781_v2 = vld [vmem:[%s8113_s10 + $0x18] sm:$0xff] }
  0xe3   : > { %7813 = vrot.lane.b32.xlu0 %v8489_v56, %s7941_s16  ;;  %7818 = vrot.lane.b32.xlu1 %v7817_v1, %s7941_s16  ;;  %v7669_v12 = vpop.permute.xlu0 %7668  ;;  %v3166_v56 = vsel %vm1001_vm6, %v7650_v4, %v7651_v30  ;;  %v7676_v54 = vunpack.i.h.bf16 %v8695_v7  ;;  %v7675_v45 = vunpack.i.l.bf16 %v8695_v7 }
  0xe4   : > { %6979 = vmatprep.subr.msk.mxu0 %vm619_vm4, %v8317_v38  ;;  %2758 = vmatprep.mubr.f32.mxu1 %v7938_v0  ;;  %v7671_v17 = vunpack.i.h.bf16 %v7669_v12  ;;  %v7670_v43 = vunpack.i.l.bf16 %v7669_v12  ;;  %v7655_v38 = vunpack.i.l.bf16 %v8643_v21  ;;  %v7223_v24 = vpack.c.bf16 %v3174_v9, %v3166_v56  ;;  %v6992_v9 = vld [vmem:[%s9209_s3 + $0x20] sm:$0xff]  ;;  %v6004_v56 = vld [vmem:[%s8113_s10 + $0x28] sm:$0xf] }
  0xe5   : > { %6980 = vmatpush1.msk.msra.mxu0 %vm619_vm4, %v8310_v35  ;;  %6978 = vmatmul.mubr.msk.f32.vlgmr.msra.gmra.mrb[2].mxu1 %vm294_vm3, %v6966_v15  ;;  %v2772_v35 = vcombine.high %v2433_v19, %v2433_v19  ;;  %v3170_v58 = vsel %vm1001_vm6, %v7675_v45, %v7676_v54 }
  0xe6   : > { %2856 = vmatprep.mubr.f32.mxu0 %v7938_v0  ;;  %6985 = vmatprep.subr.msk.mxu0 %vm619_vm4, %v8342_v42  ;;  %v7684_v26 = vpop.permute.xlu1 %7683  ;;  %v3165_v36 = vsel %vm1001_vm6, %v7670_v43, %v7650_v4  ;;  %v3173_v37 = vsel %vm1001_vm6, %v7671_v17, %v7660_v27  ;;  %v3168_v42 = vsel %vm1001_vm6, %v7655_v38, %v7656_v22 }
  0xe7   : > { %6981 = vmatmul.mubr.msk.f32.vlgmr.msra.gmra.mrb[0].mxu0 %vm615_vm5, %v8714_v20  ;;  %6982 = vmatprep.subr.msk.mxu1 %vm619_vm4, %v2770_v16  ;;  %v7679_v28 = vpop.permute.xlu0 %7678  ;;  %v7686_v29 = vunpack.i.h.bf16 %v7684_v26  ;;  %v7685_v44 = vunpack.i.l.bf16 %v7684_v26  ;;  %v7229_v21 = vpack.c.bf16 %v3176_v46, %v3168_v42  ;;  %v7226_v47 = vpack.c.bf16 %v3173_v37, %v3165_v36  ;;  %v6754_v42 = vld [vmem:[%s9210_s4] sm:$0xff] }
  0xe8   : > { %6986 = vmatpush1.msk.msra.mxu0 %vm619_vm4, %v8336_v41  ;;  %7823 = vrot.lane.b32.xlu0 %v7822_v18, %s7941_s16  ;;  %v8755_v41 = vcombine.high %v8737_v31, %v8737_v31  ;;  %v7681_v48 = vunpack.i.h.bf16 %v7679_v28  ;;  %v7680_v53 = vunpack.i.l.bf16 %v7679_v28  ;;  %v3167_v61 = vsel %vm1001_vm6, %v7651_v30, %v7655_v38 }
  0xe9   : > { %6419 = vrot.lane.b32.xlu1 %v8727_v23, %s7941_s16  ;;  %6983 = vmatpush1.msk.msra.mxu1 %vm619_vm4, %v2431_v13  ;;  %v3178_v51 = vsel %vm1001_vm6, %v7685_v44, %v7686_v29  ;;  %v3177_v59 = vsel %vm1001_vm6, %v7666_v10, %v7685_v44  ;;  %v7232_v13 = vpack.c.bf16 %v3175_v52, %v3167_v61 }
  0xea   : > { %7225 = vmatprep.subr.msk.bf16.mxu0 %vm8134_vm2, %v7223_v24  ;;  %2927 = vmatprep.mubr.f32.mxu1 %v7938_v0  ;;  %v3504_v15 = vpop.permute.xlu1 %3503  ;;  %v7235_v57 = vpack.c.bf16 %v3178_v51, %v3170_v58  ;;  %v3169_v4 = vsel %vm1001_vm6, %v7656_v22, %v7675_v45  ;;  %v3172_v3 = vsel %vm1001_vm6, %v7680_v53, %v7681_v48  ;;  %v6991_v24 = vld [vmem:[%s9208_s2 + $0x20] sm:$0xff] }
  0xeb   : > { %6988 = vmatprep.subr.msk.mxu1 %vm619_vm4, %v2772_v35  ;;  %6984 = vmatmul.mubr.msk.f32.vlgmr.msra.gmra.mrb[0].mxu1 %vm615_vm5, %v8714_v20  ;;  %v7689_v32 = vpop.permute.xlu0 %7688  ;;  %v7238_v30 = vpack.c.bf16 %v3177_v59, %v3169_v4  ;;  %v8799_v10 = vcombine.high %v8781_v2, %v8781_v2  ;;  %v3171_v11 = vsel %vm1001_vm6, %v7676_v54, %v7680_v53 }
  0xec   : > { %6989 = vmatpush1.msk.msra.mxu1 %vm619_vm4, %v2433_v19  ;;  %2998 = vmatprep.mubr.f32.mxu0 %v7938_v0  ;;  %v7691_v55 = vunpack.i.h.bf16 %v7689_v32  ;;  %v7690_v5 = vunpack.i.l.bf16 %v7689_v32 }
  0xed   : > { %7231 = vmatprep.subr.msk.bf16.mxu1 %vm8134_vm2, %v7229_v21  ;;  %6421 = vrot.lane.b32.xlu0 %v8737_v31, %s7941_s16 }
  0xee   : > { %6423 = vrot.lane.b32.xlu1 %v8755_v41, %s7941_s16  ;;  %6987 = vmatmul.mubr.msk.f32.vlgmr.msra.gmra.mrb[2].mxu0 %vm615_vm5, %v8714_v20  ;;  %v3180_v1 = vsel %vm1001_vm6, %v7690_v5, %v7691_v55  ;;  %v3508_v27 = vpop.permute.xlu1 %3507  ;;  %v3179_v6 = vsel %vm1001_vm6, %v7686_v29, %v7690_v5 }
  0xef   : > { %7228 = vmatpush1.bf16.msk.msra.mxu0 %vm8134_vm2, %v7226_v47  ;;  %3069 = vmatprep.mubr.f32.mxu1 %v7938_v0  ;;  %v3506_v50 = vpop.permute.xlu0 %3505  ;;  %v7241_v7 = vpack.c.bf16 %v3180_v1, %v3172_v3  ;;  %v7244_v17 = vpack.c.bf16 %v3179_v6, %v3171_v11  ;;  %v7942_v47 = vmov 0  }
  0xf0   : > { %6990 = vmatmul.mubr.msk.f32.vlgmr.msra.gmra.mrb[2].mxu1 %vm615_vm5, %v8714_v20  ;;  %3272 = vmatprep.mubr.f32.mxu0 %v7938_v0  ;;  %v3520_v12 = vsel %vm1001_vm6, %v3504_v15, %v3506_v50  ;;  %v3521_v46 = vsel %vm1001_vm6, %v3506_v50, %v3508_v27 }
  0xf1   : > { %7234 = vmatpush1.bf16.msk.msra.mxu1 %vm8134_vm2, %v7232_v13  ;;  %6425 = vrot.lane.b32.xlu0 %v8781_v2, %s7941_s16 }
  0xf2   : > { %6417 = vrot.lane.b32.xlu1 %v8698_v8, %s7941_s16  ;;  %7237 = vmatprep.subr.msk.bf16.mxu0 %vm8134_vm2, %v7235_v57  ;;  %v3502_v16 = vpop.permute.xlu1 %3501 }
  0xf3   : > { %6995 = vmatmul.mubr.msk.f32.vlgmr.msra.gmra.mrb[0].mxu0 %vm294_vm3, %v6992_v9  ;;  %3343 = vmatprep.mubr.f32.mxu1 %v7938_v0  ;;  %v3510_v43 = vpop.permute.xlu0 %3509  ;;  %v3519_v20 = vsel %vm1001_vm6, %v3502_v16, %v3504_v15 }
  0xf4   : > { %7240 = vmatpush1.bf16.msk.msra.mxu0 %vm8134_vm2, %v7238_v30  ;;  %7243 = vmatprep.subr.msk.bf16.mxu1 %vm8134_vm2, %v7241_v7  ;;  %v3522_v19 = vsel %vm1001_vm6, %v3508_v27, %v3510_v43 }
  0xf5   : > { %6427 = vrot.lane.b32.xlu0 %v8799_v10, %s7941_s16  ;;  %7005 = vmatprep.subr.msk.mxu0 %vm619_vm4, %v3520_v12 }
  0xf6   : > { %6429 = vrot.lane.b32.xlu1 %v8539_v49, %s7941_s16  ;;  %6998 = vmatmul.mubr.msk.f32.vlgmr.msra.gmra.mrb[0].mxu1 %vm294_vm3, %v6992_v9  ;;  %v3514_v18 = vpop.permute.xlu1 %3513 }
  0xf7   : > { %7246 = vmatpush1.bf16.msk.msra.mxu1 %vm8134_vm2, %v7244_v17  ;;  %3414 = vmatprep.mubr.f32.mxu0 %v7938_v0  ;;  %v3512_v22 = vpop.permute.xlu0 %3511 }
  0xf8   : > { %7001 = vmatmul.mubr.msk.f32.vlgmr.msra.gmra.mrb[2].mxu0 %vm294_vm3, %v6992_v9  ;;  %3485 = vmatprep.mubr.f32.mxu1 %v7938_v0  ;;  %v3524_v38 = vsel %vm1001_vm6, %v3512_v22, %v3514_v18  ;;  %v3523_v35 = vsel %vm1001_vm6, %v3510_v43, %v3512_v22 }
  0xf9   : > { %6431 = vrot.lane.b32.xlu0 %v8554_v60, %s7941_s16  ;;  %7006 = vmatpush1.msk.msra.mxu0 %vm619_vm4, %v3519_v20 }
  0xfa   : > { %6433 = vrot.lane.b32.xlu1 %v6004_v56, %s7941_s16  ;;  %7008 = vmatprep.subr.msk.mxu1 %vm619_vm4, %v3522_v19  ;;  %v3518_v26 = vpop.permute.xlu1 %3517  ;;  %v7018_v19 = vld [vmem:[%s9209_s3 + $0x28] sm:$0xff]  ;;  %s6793_s16 = sshll.u32 %s256_s13, 4  ;;  %s9153_s16 = int_to_ptr.vmem [resolvable:$true] %s6793_s16 }
  0xfb   : > { %7004 = vmatmul.mubr.msk.f32.vlgmr.msra.gmra.mrb[2].mxu1 %vm294_vm3, %v6992_v9  ;;  %3610 = vmatprep.mubr.f32.mxu0 %v7938_v0  ;;  %v3516_v28 = vpop.permute.xlu0 %3515  ;;  %s7842_s17 = scalar_lea.vmem %s9153_s16, 1024  ;;  %p7849_p4 = scmp.lt.s32.totalorder %s9153_s16, %s7847_s9 }
  0xfc   : > { %7009 = vmatpush1.msk.msra.mxu1 %vm619_vm4, %v3521_v46  ;;  %7011 = vmatprep.subr.msk.mxu0 %vm619_vm4, %v3524_v38  ;;  %v3526_v29 = vsel %vm1001_vm6, %v3516_v28, %v3518_v26  ;;  %v3525_v44 = vsel %vm1001_vm6, %v3514_v18, %v3516_v28  ;;  %p7843_p0 = scmp.ne.s32.totalorder %s9153_s16, %s7842_s17 }
  0xfd   : > { %7007 = vmatmul.mubr.msk.f32.vlgmr.msra.gmra.mrb[0].mxu0 %vm615_vm5, %v6991_v24  ;;  %3681 = vmatprep.mubr.f32.mxu1 %v7938_v0 }
  0xfe   : > { %7012 = vmatpush1.msk.msra.mxu0 %vm619_vm4, %v3523_v35  ;;  %7014 = vmatprep.subr.msk.mxu1 %vm619_vm4, %v3526_v29  ;;  %v7699_v36 = vpop.permute.xlu1 %7698  ;;  %p7844_p1 = pnand %p7843_p0, %p8025_p3 }
  0xff   : > { %7010 = vmatmul.mubr.msk.f32.vlgmr.msra.gmra.mrb[0].mxu1 %vm615_vm5, %v6991_v24  ;;  %v7694_v37 = vpop.permute.xlu0 %7693  ;;  %3752 = vmatprep.mubr.f32.mxu0 %v7938_v0  ;;  %v7701_v21 = vunpack.i.h.bf16 %v7699_v36  ;;  %v7700_v15 = vunpack.i.l.bf16 %v7699_v36 }
 0x100   : > { %7015 = vmatpush1.msk.msra.mxu1 %vm619_vm4, %v3525_v44  ;;  %3823 = vmatprep.mubr.f32.mxu1 %v7938_v0  ;;  %v7696_v54 = vunpack.i.h.bf16 %v7694_v37  ;;  %v7695_v45 = vunpack.i.l.bf16 %v7694_v37  ;;  %p7845_p2 = pneg %p7844_p1 }
 0x101   : > { %7013 = vmatmul.mubr.msk.f32.vlgmr.msra.gmra.mrb[2].mxu0 %vm615_vm5, %v6991_v24  ;;  %7827 = vset.pattern.permute.xlu0 %v7942_v47  ;;  %v3922_v58 = vsel %vm1756_vm7, %v7700_v15, %v7701_v21 }
 0x102   : > { %v7709_v48 = vpop.permute.xlu1 %7708  ;;  %4026 = vmatprep.mubr.f32.mxu0 %v7938_v0  ;;  %6757 = vperm.xlu0 %7827, %v6754_v42   ;;  %v3920_v5 = vsel %vm1756_vm7, %v7695_v45, %v7696_v54  ;;  %v3921_v61 = vsel %vm1756_vm7, %v7696_v54, %v7700_v15 }
 0x103   : > { %v7704_v53 = vpop.permute.xlu0 %7703  ;;  %v7711_v51 = vunpack.i.h.bf16 %v7709_v48  ;;  %v7710_v32 = vunpack.i.l.bf16 %v7709_v48  ;;  %7016 = vmatmul.mubr.msk.f32.vlgmr.msra.gmra.mrb[2].mxu1 %vm615_vm5, %v6991_v24 }
 0x104   : > { %v7706_v52 = vunpack.i.h.bf16 %v7704_v53  ;;  %v7705_v55 = vunpack.i.l.bf16 %v7704_v53  ;;  %4097 = vmatprep.mubr.f32.mxu1 %v7938_v0 }
 0x105   : > { %v3930_v59 = vsel %vm1756_vm7, %v7710_v32, %v7711_v51 }
 0x106   : > { %v3928_v57 = vsel %vm1756_vm7, %v7705_v55, %v7706_v52  ;;  %v3929_v1 = vsel %vm1756_vm7, %v7706_v52, %v7710_v32  ;;  %v7253_v27 = vpack.c.bf16 %v3930_v59, %v3922_v58  ;;  %v7719_v13 = vpop.permute.xlu1 %7718  ;;  %v4605_v59 = vld [vmem:[%s8054_s26 + $0x70] sm:$0x1] }
 0x107   : > { %v7247_v4 = vpack.c.bf16 %v3928_v57, %v3920_v5  ;;  %v7256_v3 = vpack.c.bf16 %v3929_v1, %v3921_v61  ;;  %v7714_v50 = vpop.permute.xlu0 %7713  ;;  %v7720_v7 = vunpack.i.l.bf16 %v7719_v13  ;;  %v7721_v9 = vunpack.i.h.bf16 %v7719_v13  ;;  %v7017_v5 = vld [vmem:[%s9208_s2 + $0x28] sm:$0xff] }
 0x108   : > { %v7716_v30 = vunpack.i.h.bf16 %v7714_v50  ;;  %v7715_v6 = vunpack.i.l.bf16 %v7714_v50  ;;  %7255 = vmatprep.subr.msk.bf16.mxu1 %vm8134_vm2, %v7253_v27  ;;  %v4604_v57 = vld [vmem:[%s8054_s26 + $0x68] sm:$0x1]  ;;  %v4609_v27 = vld [vmem:[%s8054_s26 + $0x90] sm:$0x1] }
 0x109   : > { %7249 = vmatprep.subr.msk.bf16.mxu0 %vm8134_vm2, %v7247_v4  ;;  %7258 = vmatpush1.bf16.msk.msra.mxu1 %vm8134_vm2, %v7256_v3  ;;  %v3923_v56 = vsel %vm1756_vm7, %v7701_v21, %v7720_v7  ;;  %v3924_v22 = vsel %vm1756_vm7, %v7720_v7, %v7721_v9  ;;  %v7271_v4 = vpack.c.bf16 %v4605_v59, %v8569_v25  ;;  %v4606_v7 = vld [vmem:[%s8054_s26 + $0x78] sm:$0x1]  ;;  %v4608_v25 = vld [vmem:[%s8054_s26 + $0x88] sm:$0x1] }
 0x10a   : > { %v3919_v11 = vsel %vm1756_vm7, %v7715_v6, %v7695_v45  ;;  %v3927_v12 = vsel %vm1756_vm7, %v7716_v30, %v7705_v55  ;;  %v7729_v16 = vpop.permute.xlu1 %7728  ;;  %v7274_v30 = vpack.c.bf16 %v4604_v57, %v8587_v40  ;;  %v4607_v6 = vld [vmem:[%s8054_s26 + $0x80] sm:$0x1] }
 0x10b   : > { %v7250_v17 = vpack.c.bf16 %v3927_v12, %v3919_v11  ;;  %v7724_v43 = vpop.permute.xlu0 %7723  ;;  %v7731_v20 = vunpack.i.h.bf16 %v7729_v16  ;;  %v7730_v18 = vunpack.i.l.bf16 %v7729_v16  ;;  %v7277_v40 = vpack.c.bf16 %v4607_v6, %v8560_v62  ;;  %v4603_v16 = vld [vmem:[%s8054_s26 + $0x48] sm:$0xff] }
 0x10c   : > { %7024 = vmatmul.mubr.msk.f32.vlgmr.msra.gmra.mrb[0].mxu1 %vm294_vm3, %v7018_v19  ;;  %v7726_v26 = vunpack.i.h.bf16 %v7724_v43  ;;  %v7725_v46 = vunpack.i.l.bf16 %v7724_v43  ;;  %v7286_v62 = vpack.c.bf16 %v4608_v25, %v8563_v14 }
 0x10d   : > { %v3931_v38 = vsel %vm1756_vm7, %v7711_v51, %v7730_v18  ;;  %v3932_v24 = vsel %vm1756_vm7, %v7730_v18, %v7731_v20  ;;  %7252 = vmatpush1.bf16.msk.msra.mxu0 %vm8134_vm2, %v7250_v17  ;;  %4239 = vmatprep.mubr.f32.mxu1 %v7938_v0  ;;  %v4611_v17 = vld [vmem:[%s8054_s26 + $0xa0] sm:$0x1]  ;;  %v7044_v18 = vld [vmem:[%s9209_s3 + $0x30] sm:$0xff] }
 0x10e   : > { %v7259_v35 = vpack.c.bf16 %v3932_v24, %v3924_v22  ;;  %v7262_v28 = vpack.c.bf16 %v3931_v38, %v3923_v56  ;;  %v4258_v29 = vpop.permute.xlu1 %4257  ;;  %v3925_v42 = vsel %vm1756_vm7, %v7721_v9, %v7725_v46  ;;  %v3926_v54 = vsel %vm1756_vm7, %v7725_v46, %v7726_v26 }
 0x10f   : > { %v7734_v44 = vpop.permute.xlu0 %7733  ;;  %v7283_v9 = vpack.c.bf16 %v4609_v27, %v8631_v39  ;;  %v7289_v22 = vpack.c.bf16 %v4611_v17, %v4603_v16 }
 0x110   : > { %v7736_v36 = vunpack.i.h.bf16 %v7734_v44  ;;  %v7735_v37 = vunpack.i.l.bf16 %v7734_v44  ;;  %7261 = vmatprep.subr.msk.bf16.mxu0 %vm8134_vm2, %v7259_v35  ;;  %7021 = vmatmul.mubr.msk.f32.vlgmr.msra.gmra.mrb[0].mxu0 %vm294_vm3, %v7018_v19 }
 0x111   : > { %7264 = vmatpush1.bf16.msk.msra.mxu0 %vm8134_vm2, %v7262_v28  ;;  %4168 = vmatprep.mubr.f32.mxu0 %v7938_v0 }
 0x112   : > { %v3933_v45 = vsel %vm1756_vm7, %v7731_v20, %v7735_v37  ;;  %v3934_v21 = vsel %vm1756_vm7, %v7735_v37, %v7736_v36  ;;  %v4262_v15 = vpop.permute.xlu1 %4261  ;;  %v7280_v20 = vpack.c.bf16 %v4606_v7, %v8572_v63 }
 0x113   : > { %v7265_v47 = vpack.c.bf16 %v3934_v21, %v3926_v54  ;;  %v7268_v48 = vpack.c.bf16 %v3933_v45, %v3925_v42  ;;  %v4260_v53 = vpop.permute.xlu0 %4259 }
 0x114   : > { %v4274_v51 = vsel %vm1756_vm7, %v4258_v29, %v4260_v53  ;;  %7027 = vmatmul.mubr.msk.f32.vlgmr.msra.gmra.mrb[2].mxu0 %vm294_vm3, %v7018_v19  ;;  %v4275_v61 = vsel %vm1756_vm7, %v4260_v53, %v4262_v15 }
 0x115   : > { %7267 = vmatprep.subr.msk.bf16.mxu1 %vm8134_vm2, %v7265_v47  ;;  %7031 = vmatprep.subr.msk.mxu0 %vm619_vm4, %v4274_v51 }
 0x116   : > { %7270 = vmatpush1.bf16.msk.msra.mxu1 %vm8134_vm2, %v7268_v48  ;;  %v4256_v32 = vpop.permute.xlu1 %4255  ;;  %4364 = vmatprep.mubr.f32.mxu0 %v7938_v0 }
 0x117   : > { %v4264_v52 = vpop.permute.xlu0 %4263  ;;  %v4273_v55 = vsel %vm1756_vm7, %v4256_v32, %v4258_v29 }
 0x118   : > { %v4276_v58 = vsel %vm1756_vm7, %v4262_v15, %v4264_v52  ;;  %7032 = vmatpush1.msk.msra.mxu0 %vm619_vm4, %v4273_v55 }
 0x119   : > { %7034 = vmatprep.subr.msk.mxu1 %vm619_vm4, %v4276_v58  ;;  %7030 = vmatmul.mubr.msk.f32.vlgmr.msra.gmra.mrb[2].mxu1 %vm294_vm3, %v7018_v19  ;;  %v4610_v19 = vld [vmem:[%s8054_s26 + $0x98] sm:$0x1]  ;;  %s7122_s26 = sshll.u32 %s7924_s22, 3 }
 0x11a   : > { %7035 = vmatpush1.msk.msra.mxu1 %vm619_vm4, %v4275_v61  ;;  %v4268_v1 = vpop.permute.xlu1 %4267  ;;  %7033 = vmatmul.mubr.msk.f32.vlgmr.msra.gmra.mrb[0].mxu0 %vm615_vm5, %v7017_v5  ;;  %v7292_v63 = vpack.c.bf16 %v4610_v19, %v8634_v34  ;;  %s6789_s14 = sadd.s32 %s7123_s12, %s7122_s26  ;;  %s7848_s26 = scalar_lea.vmem %s7847_s9, 2048 }
 0x11b   : > { %v4266_v13 = vpop.permute.xlu0 %4265  ;;  %4435 = vmatprep.mubr.f32.mxu1 %v7938_v0  ;;  %4506 = vmatprep.mubr.f32.mxu0 %v7938_v0  ;;  %s7124_s10 = sshll.u32 %s6789_s14, 7  ;;  %p7850_p5 = scmp.lt.s32.totalorder %s7848_s26, %s7842_s17 }
 0x11c   : > { %v4277_v3 = vsel %vm1756_vm7, %v4264_v52, %v4266_v13  ;;  %v4278_v50 = vsel %vm1756_vm7, %v4266_v13, %v4268_v1  ;;  %s9151_s15 = scalar_lea.hbm %s9211_s5, %s7124_s10 }
 0x11d   : > { %7037 = vmatprep.subr.msk.mxu0 %vm619_vm4, %v4278_v50  ;;  %7036 = vmatmul.mubr.msk.f32.vlgmr.msra.gmra.mrb[0].mxu1 %vm615_vm5, %v7017_v5  ;;  %p7851_p6 = por %p7850_p5, %p7849_p4 }
 0x11e   : > { %7038 = vmatpush1.msk.msra.mxu0 %vm619_vm4, %v4277_v3  ;;  %v4272_v11 = vpop.permute.xlu1 %4271  ;;  %4577 = vmatprep.mubr.f32.mxu1 %v7938_v0 }
 0x11f   : > { %v4270_v12 = vpop.permute.xlu0 %4269  ;;  %7039 = vmatmul.mubr.msk.f32.vlgmr.msra.gmra.mrb[2].mxu0 %vm615_vm5, %v7017_v5  ;;  %7273 = vmatprep.subr.msk.bf16.mxu0 %vm8134_vm2, %v7271_v4  ;;  %p7852_p7 = pnand %p7851_p6, %p7845_p2 }
 0x120   : > { %v4279_v43 = vsel %vm1756_vm7, %v4268_v1, %v4270_v12  ;;  %v4280_v39 = vsel %vm1756_vm7, %v4270_v12, %v4272_v11  ;;  %7276 = vmatpush1.bf16.msk.msra.mxu0 %vm8134_vm2, %v7274_v30  ;;  %4707 = vmatprep.mubr.f32.mxu0 %v7938_v0  ;;  %v7070_v30 = vld [vmem:[%s9209_s3 + $0x38] sm:$0xff] }
 0x121   : > { %7040 = vmatprep.subr.msk.mxu1 %vm619_vm4, %v4280_v39  ;;  %7285 = vmatprep.subr.msk.bf16.mxu0 %vm8134_vm2, %v7283_v9 }
 0x122   : > { %7041 = vmatpush1.msk.msra.mxu1 %vm619_vm4, %v4279_v43  ;;  %v8953_v56 = vpop.permute.xlu1 %7743 }
 0x123   : > { %v7739_v38 = vpop.permute.xlu0 %7738  ;;  %7042 = vmatmul.mubr.msk.f32.vlgmr.msra.gmra.mrb[2].mxu1 %vm615_vm5, %v7017_v5  ;;  %7279 = vmatprep.subr.msk.bf16.mxu1 %vm8134_vm2, %v7277_v40  ;;  %v7746_v44 = vunpack.i.h.bf16 %v8953_v56  ;;  %v7745_v36 = vunpack.i.l.bf16 %v8953_v56  ;;  %v7069_v56 = vld [vmem:[%s9208_s2 + $0x38] sm:$0xff] }
 0x124   : > { %7047 = vmatmul.mubr.msk.f32.vlgmr.msra.gmra.mrb[0].mxu0 %vm294_vm3, %v7044_v18  ;;  %7282 = vmatpush1.bf16.msk.msra.mxu1 %vm8134_vm2, %v7280_v20  ;;  %v7741_v14 = vunpack.i.h.bf16 %v7739_v38  ;;  %v7740_v24 = vunpack.i.l.bf16 %v7739_v38 }
 0x125   : > { %7288 = vmatpush1.bf16.msk.msra.mxu0 %vm8134_vm2, %v7286_v62  ;;  %4778 = vmatprep.mubr.f32.mxu1 %v7938_v0  ;;  %v5330_v53 = vsel %vm1001_vm6, %v7745_v36, %v7746_v44 }
 0x126   : > { %v7754_v26 = vpop.permute.xlu1 %7753  ;;  %4849 = vmatprep.mubr.f32.mxu0 %v7938_v0  ;;  %7291 = vmatprep.subr.msk.bf16.mxu1 %vm8134_vm2, %v7289_v22  ;;  %v5328_v37 = vsel %vm1001_vm6, %v7740_v24, %v7741_v14  ;;  %v5329_v59 = vsel %vm1001_vm6, %v7741_v14, %v7745_v36 }
 0x127   : > { %v7749_v46 = vpop.permute.xlu0 %7748  ;;  %7050 = vmatmul.mubr.msk.f32.vlgmr.msra.gmra.mrb[0].mxu1 %vm294_vm3, %v7044_v18  ;;  %7057 = vmatprep.subr.msk.mxu0 %vm619_vm4, %v8727_v23  ;;  %v7756_v28 = vunpack.i.h.bf16 %v7754_v26  ;;  %v7755_v29 = vunpack.i.l.bf16 %v7754_v26  ;;  %v7043_v23 = vld [vmem:[%s9208_s2 + $0x30] sm:$0xff] }
 0x128   : > { %v7751_v34 = vunpack.i.h.bf16 %v7749_v46  ;;  %v7750_v35 = vunpack.i.l.bf16 %v7749_v46  ;;  %7053 = vmatmul.mubr.msk.f32.vlgmr.msra.gmra.mrb[2].mxu0 %vm294_vm3, %v7044_v18  ;;  %7294 = vmatpush1.bf16.msk.msra.mxu1 %vm8134_vm2, %v7292_v63 }
 0x129   : > { %4920 = vmatprep.mubr.f32.mxu1 %v7938_v0  ;;  %7058 = vmatpush1.msk.msra.mxu0 %vm619_vm4, %v8698_v8  ;;  %v5338_v8 = vsel %vm1001_vm6, %v7755_v29, %v7756_v28 }
 0x12a   : > { %v5336_v42 = vsel %vm1001_vm6, %v7750_v35, %v7751_v34  ;;  %v7764_v54 = vpop.permute.xlu1 %7763  ;;  %5018 = vmatprep.mubr.f32.mxu0 %v7938_v0  ;;  %7063 = vmatprep.subr.msk.mxu0 %vm619_vm4, %v8799_v10  ;;  %v7301_v52 = vpack.c.bf16 %v5338_v8, %v5330_v53 }
 0x12b   : > { %v7295_v45 = vpack.c.bf16 %v5336_v42, %v5328_v37  ;;  %v7759_v21 = vpop.permute.xlu0 %7758  ;;  %7056 = vmatmul.mubr.msk.f32.vlgmr.msra.gmra.mrb[2].mxu1 %vm294_vm3, %v7044_v18  ;;  %7060 = vmatprep.subr.msk.mxu1 %vm619_vm4, %v8755_v41  ;;  %v7765_v48 = vunpack.i.l.bf16 %v7764_v54  ;;  %v7766_v10 = vunpack.i.h.bf16 %v7764_v54  ;;  %v5337_v41 = vsel %vm1001_vm6, %v7751_v34, %v7755_v29 }
 0x12c   : > { %v7761_v15 = vunpack.i.h.bf16 %v7759_v21  ;;  %v7760_v47 = vunpack.i.l.bf16 %v7759_v21  ;;  %7059 = vmatmul.mubr.msk.f32.vlgmr.msra.gmra.mrb[0].mxu0 %vm615_vm5, %v7043_v23  ;;  %7061 = vmatpush1.msk.msra.mxu1 %vm619_vm4, %v8737_v31  ;;  %v7304_v13 = vpack.c.bf16 %v5337_v41, %v5329_v59 }
 0x12d   : > { %7064 = vmatpush1.msk.msra.mxu0 %vm619_vm4, %v8781_v2  ;;  %5089 = vmatprep.mubr.f32.mxu1 %v7938_v0  ;;  %v5331_v61 = vsel %vm1001_vm6, %v7746_v44, %v7765_v48 }
 0x12e   : > { %v5327_v51 = vsel %vm1001_vm6, %v7760_v47, %v7740_v24  ;;  %v5335_v32 = vsel %vm1001_vm6, %v7761_v15, %v7750_v35  ;;  %7297 = vmatprep.subr.msk.bf16.mxu0 %vm8134_vm2, %v7295_v45  ;;  %7066 = vmatprep.subr.msk.mxu1 %vm619_vm4, %v8554_v60  ;;  %v7774_v31 = vpop.permute.xlu1 %7773  ;;  %v5332_v60 = vsel %vm1001_vm6, %v7765_v48, %v7766_v10 }
 0x12f   : > { %v7298_v55 = vpack.c.bf16 %v5335_v32, %v5327_v51  ;;  %v7769_v5 = vpop.permute.xlu0 %7768  ;;  %v7776_v58 = vunpack.i.h.bf16 %v7774_v31  ;;  %v7775_v2 = vunpack.i.l.bf16 %v7774_v31  ;;  %7062 = vmatmul.mubr.msk.f32.vlgmr.msra.gmra.mrb[0].mxu1 %vm615_vm5, %v7043_v23  ;;  %5160 = vmatprep.mubr.f32.mxu0 %v7938_v0 }
 0x130   : > { %7067 = vmatpush1.msk.msra.mxu1 %vm619_vm4, %v8539_v49  ;;  %7065 = vmatmul.mubr.msk.f32.vlgmr.msra.gmra.mrb[2].mxu0 %vm615_vm5, %v7043_v23  ;;  %v7770_v57 = vunpack.i.l.bf16 %v7769_v5  ;;  %v7771_v4 = vunpack.i.h.bf16 %v7769_v5 }
 0x131   : > { %v5339_v1 = vsel %vm1001_vm6, %v7756_v28, %v7775_v2  ;;  %v5340_v27 = vsel %vm1001_vm6, %v7775_v2, %v7776_v58  ;;  %7303 = vmatprep.subr.msk.bf16.mxu1 %vm8134_vm2, %v7301_v52  ;;  %7300 = vmatpush1.bf16.msk.msra.mxu0 %vm8134_vm2, %v7298_v55 }
 0x132   : > { %v7307_v3 = vpack.c.bf16 %v5340_v27, %v5332_v60  ;;  %v7310_v50 = vpack.c.bf16 %v5339_v1, %v5331_v61  ;;  %5231 = vmatprep.mubr.f32.mxu1 %v7938_v0  ;;  %v5666_v49 = vpop.permute.xlu1 %5665  ;;  %5434 = vmatprep.mubr.f32.mxu0 %v7938_v0  ;;  %v5333_v11 = vsel %vm1001_vm6, %v7766_v10, %v7770_v57 }
 0x133   : > { %v7779_v6 = vpop.permute.xlu0 %7778  ;;  %7068 = vmatmul.mubr.msk.f32.vlgmr.msra.gmra.mrb[2].mxu1 %vm615_vm5, %v7043_v23  ;;  %v5334_v25 = vsel %vm1001_vm6, %v7770_v57, %v7771_v4  ;;  %v7096_v57 = vld [vmem:[%s9209_s3 + $0x40] sm:$0xff] }
 0x134   : > { %v7781_v7 = vunpack.i.h.bf16 %v7779_v6  ;;  %v7780_v9 = vunpack.i.l.bf16 %v7779_v6  ;;  %7306 = vmatpush1.bf16.msk.msra.mxu1 %vm8134_vm2, %v7304_v13  ;;  %7309 = vmatprep.subr.msk.bf16.mxu0 %vm8134_vm2, %v7307_v3 }
 0x135   : > { %7073 = vmatmul.mubr.msk.f32.vlgmr.msra.gmra.mrb[0].mxu0 %vm294_vm3, %v7070_v30  ;;  %5505 = vmatprep.mubr.f32.mxu1 %v7938_v0 }
 0x136   : > { %v5341_v12 = vsel %vm1001_vm6, %v7776_v58, %v7780_v9  ;;  %v5342_v40 = vsel %vm1001_vm6, %v7780_v9, %v7781_v7  ;;  %7312 = vmatpush1.bf16.msk.msra.mxu0 %vm8134_vm2, %v7310_v50  ;;  %v5670_v16 = vpop.permute.xlu1 %5669  ;;  %5576 = vmatprep.mubr.f32.mxu0 %v7938_v0 }
 0x137   : > { %v7313_v17 = vpack.c.bf16 %v5342_v40, %v5334_v25  ;;  %v7316_v43 = vpack.c.bf16 %v5341_v12, %v5333_v11  ;;  %v5668_v39 = vpop.permute.xlu0 %5667  ;;  %7076 = vmatmul.mubr.msk.f32.vlgmr.msra.gmra.mrb[0].mxu1 %vm294_vm3, %v7070_v30 }
 0x138   : > { %v5682_v20 = vsel %vm1001_vm6, %v5666_v49, %v5668_v39  ;;  %5647 = vmatprep.mubr.f32.mxu1 %v7938_v0  ;;  %v5683_v38 = vsel %vm1001_vm6, %v5668_v39, %v5670_v16 }
 0x139   : > { %7315 = vmatprep.subr.msk.bf16.mxu1 %vm8134_vm2, %v7313_v17  ;;  %7083 = vmatprep.subr.msk.mxu0 %vm619_vm4, %v5682_v20 }
 0x13a   : > { %7318 = vmatpush1.bf16.msk.msra.mxu1 %vm8134_vm2, %v7316_v43  ;;  %v5664_v18 = vpop.permute.xlu1 %5663  ;;  %7079 = vmatmul.mubr.msk.f32.vlgmr.msra.gmra.mrb[2].mxu0 %vm294_vm3, %v7070_v30 }
 0x13b   : > { %v5672_v62 = vpop.permute.xlu0 %5671  ;;  %v5681_v19 = vsel %vm1001_vm6, %v5664_v18, %v5666_v49  ;;  %5772 = vmatprep.mubr.f32.mxu0 %v7938_v0 }
 0x13c   : > { %v5684_v22 = vsel %vm1001_vm6, %v5670_v16, %v5672_v62  ;;  %7084 = vmatpush1.msk.msra.mxu0 %vm619_vm4, %v5681_v19 }
 0x13d   : > { %7086 = vmatprep.subr.msk.mxu1 %vm619_vm4, %v5684_v22  ;;  %7082 = vmatmul.mubr.msk.f32.vlgmr.msra.gmra.mrb[2].mxu1 %vm294_vm3, %v7070_v30 }
 0x13e   : > { %7087 = vmatpush1.msk.msra.mxu1 %vm619_vm4, %v5683_v38  ;;  %v5676_v63 = vpop.permute.xlu1 %5675  ;;  %7085 = vmatmul.mubr.msk.f32.vlgmr.msra.gmra.mrb[0].mxu0 %vm615_vm5, %v7069_v56 }
 0x13f   : > { %v5674_v14 = vpop.permute.xlu0 %5673  ;;  %5843 = vmatprep.mubr.f32.mxu1 %v7938_v0  ;;  %5914 = vmatprep.mubr.f32.mxu0 %v7938_v0 }
 0x140   : > { %v5685_v24 = vsel %vm1001_vm6, %v5672_v62, %v5674_v14  ;;  %v5686_v26 = vsel %vm1001_vm6, %v5674_v14, %v5676_v63 }
 0x141   : > { %7089 = vmatprep.subr.msk.mxu0 %vm619_vm4, %v5686_v26  ;;  %7088 = vmatmul.mubr.msk.f32.vlgmr.msra.gmra.mrb[0].mxu1 %vm615_vm5, %v7069_v56 }
 0x142   : > { %7090 = vmatpush1.msk.msra.mxu0 %vm619_vm4, %v5685_v24  ;;  %v5680_v46 = vpop.permute.xlu1 %5679  ;;  %5985 = vmatprep.mubr.f32.mxu1 %v7938_v0 }
 0x143   : > { %v5678_v34 = vpop.permute.xlu0 %5677  ;;  %7091 = vmatmul.mubr.msk.f32.vlgmr.msra.gmra.mrb[2].mxu0 %vm615_vm5, %v7069_v56 }
 0x144   : > { %v5687_v35 = vsel %vm1001_vm6, %v5676_v63, %v5678_v34  ;;  %v5688_v28 = vsel %vm1001_vm6, %v5678_v34, %v5680_v46  ;;  %6188 = vmatprep.mubr.f32.mxu0 %v7938_v0  ;;  %v7095_v34 = vld [vmem:[%s9208_s2 + $0x40] sm:$0xff] }
 0x145   : > { %7092 = vmatprep.subr.msk.mxu1 %vm619_vm4, %v5688_v28 }
 0x146   : > { %7093 = vmatpush1.msk.msra.mxu1 %vm619_vm4, %v5687_v35  ;;  %v7789_v29 = vpop.permute.xlu1 %7788 }
 0x147   : > { %v7784_v44 = vpop.permute.xlu0 %7783  ;;  %7094 = vmatmul.mubr.msk.f32.vlgmr.msra.gmra.mrb[2].mxu1 %vm615_vm5, %v7069_v56  ;;  %v7791_v37 = vunpack.i.h.bf16 %v7789_v29  ;;  %v7790_v42 = vunpack.i.l.bf16 %v7789_v29 }
 0x148   : > { %6259 = vmatprep.mubr.f32.mxu1 %v7938_v0  ;;  %v7786_v36 = vunpack.i.h.bf16 %v7784_v44  ;;  %v7785_v23 = vunpack.i.l.bf16 %v7784_v44 }
 0x149   : > { %v6084_v53 = vsel %vm1756_vm7, %v7790_v42, %v7791_v37 }
 0x14a   : > { %v7799_v54 = vpop.permute.xlu1 %7798  ;;  %v6082_v48 = vsel %vm1756_vm7, %v7785_v23, %v7786_v36  ;;  %v6083_v41 = vsel %vm1756_vm7, %v7786_v36, %v7790_v42 }
 0x14b   : > { %v7794_v45 = vpop.permute.xlu0 %7793  ;;  %v7801_v21 = vunpack.i.h.bf16 %v7799_v54  ;;  %v7800_v8 = vunpack.i.l.bf16 %v7799_v54 }
 0x14c   : > { %v7796_v15 = vunpack.i.h.bf16 %v7794_v45  ;;  %v7795_v47 = vunpack.i.l.bf16 %v7794_v45 }
 0x14d   : > { %v6092_v10 = vsel %vm1756_vm7, %v7800_v8, %v7801_v21 }
 0x14e   : > { %v6090_v51 = vsel %vm1756_vm7, %v7795_v47, %v7796_v15  ;;  %v6091_v32 = vsel %vm1756_vm7, %v7796_v15, %v7800_v8  ;;  %v7325_v31 = vpack.c.bf16 %v6092_v10, %v6084_v53 }
 0x14f   : > { %v7319_v52 = vpack.c.bf16 %v6090_v51, %v6082_v48  ;;  %v7328_v55 = vpack.c.bf16 %v6091_v32, %v6083_v41 }
 0x150   : > { %v7804_v5 = vpop.permute.xlu0 %7803  ;;  %7327 = vmatprep.subr.msk.bf16.mxu1 %vm8134_vm2, %v7325_v31 }
 0x151   : > { %v7806_v58 = vunpack.i.h.bf16 %v7804_v5  ;;  %v7805_v2 = vunpack.i.l.bf16 %v7804_v5  ;;  %v7809_v59 = vpop.permute.xlu1 %7808  ;;  %7321 = vmatprep.subr.msk.bf16.mxu0 %vm8134_vm2, %v7319_v52  ;;  %7330 = vmatpush1.bf16.msk.msra.mxu1 %vm8134_vm2, %v7328_v55 }
 0x152   : > { %v7811_v27 = vunpack.i.h.bf16 %v7809_v59  ;;  %v7810_v13 = vunpack.i.l.bf16 %v7809_v59 }
 0x153   : > { %v6081_v61 = vsel %vm1756_vm7, %v7805_v2, %v7785_v23  ;;  %v6089_v60 = vsel %vm1756_vm7, %v7806_v58, %v7795_v47 }
 0x154   : > { %v7322_v1 = vpack.c.bf16 %v6089_v60, %v6081_v61  ;;  %7102 = vmatmul.mubr.msk.f32.vlgmr.msra.gmra.mrb[0].mxu1 %vm294_vm3, %v7096_v57  ;;  %v6085_v30 = vsel %vm1756_vm7, %v7791_v37, %v7810_v13  ;;  %v6086_v6 = vsel %vm1756_vm7, %v7810_v13, %v7811_v27 }
 0x155   : > { %v7814_v4 = vpop.permute.xlu0 %7813  ;;  %v7819_v3 = vpop.permute.xlu1 %7818  ;;  %6401 = vmatprep.mubr.f32.mxu1 %v7938_v0 }
 0x156   : > { %v7821_v50 = vunpack.i.h.bf16 %v7819_v3  ;;  %v7820_v49 = vunpack.i.l.bf16 %v7819_v3  ;;  %7324 = vmatpush1.bf16.msk.msra.mxu0 %vm8134_vm2, %v7322_v1  ;;  %v7816_v11 = vunpack.i.h.bf16 %v7814_v4  ;;  %v7815_v25 = vunpack.i.l.bf16 %v7814_v4 }
 0x158   : > { %v6093_v7 = vsel %vm1756_vm7, %v7801_v21, %v7820_v49  ;;  %v6094_v9 = vsel %vm1756_vm7, %v7820_v49, %v7821_v50  ;;  %v6087_v20 = vsel %vm1756_vm7, %v7811_v27, %v7815_v25  ;;  %v6088_v18 = vsel %vm1756_vm7, %v7815_v25, %v7816_v11 }
 0x159   : > { %v7331_v12 = vpack.c.bf16 %v6094_v9, %v6086_v6  ;;  %v7334_v40 = vpack.c.bf16 %v6093_v7, %v6085_v30  ;;  %7099 = vmatmul.mubr.msk.f32.vlgmr.msra.gmra.mrb[0].mxu0 %vm294_vm3, %v7096_v57 }
 0x15a   : > { %v7824_v16 = vpop.permute.xlu0 %7823  ;;  %6330 = vmatprep.mubr.f32.mxu0 %v7938_v0 }
 0x15b   : > { %v7826_v17 = vunpack.i.h.bf16 %v7824_v16  ;;  %v7825_v43 = vunpack.i.l.bf16 %v7824_v16  ;;  %v6420_v39 = vpop.permute.xlu1 %6419  ;;  %7333 = vmatprep.subr.msk.bf16.mxu0 %vm8134_vm2, %v7331_v12 }
 0x15c   : > { %7336 = vmatpush1.bf16.msk.msra.mxu0 %vm8134_vm2, %v7334_v40 }
 0x15d   : > { %v6095_v62 = vsel %vm1756_vm7, %v7821_v50, %v7825_v43  ;;  %v6096_v19 = vsel %vm1756_vm7, %v7825_v43, %v7826_v17 }
 0x15e   : > { %v7337_v56 = vpack.c.bf16 %v6096_v19, %v6088_v18  ;;  %v7340_v22 = vpack.c.bf16 %v6095_v62, %v6087_v20 }
 0x15f   : > { %v6422_v38 = vpop.permute.xlu0 %6421  ;;  %7105 = vmatmul.mubr.msk.f32.vlgmr.msra.gmra.mrb[2].mxu0 %vm294_vm3, %v7096_v57 }
 0x160   : > { %v6436_v63 = vsel %vm1756_vm7, %v6420_v39, %v6422_v38  ;;  %v6424_v14 = vpop.permute.xlu1 %6423  ;;  %7339 = vmatprep.subr.msk.bf16.mxu1 %vm8134_vm2, %v7337_v56  ;;  %6526 = vmatprep.mubr.f32.mxu0 %v7938_v0 }
 0x161   : > { %7109 = vmatprep.subr.msk.mxu0 %vm619_vm4, %v6436_v63  ;;  %7342 = vmatpush1.bf16.msk.msra.mxu1 %vm8134_vm2, %v7340_v22  ;;  %v6437_v35 = vsel %vm1756_vm7, %v6422_v38, %v6424_v14 }
 0x163   : > { %v6426_v24 = vpop.permute.xlu0 %6425 }
 0x164   : > { %v6438_v26 = vsel %vm1756_vm7, %v6424_v14, %v6426_v24  ;;  %v6418_v46 = vpop.permute.xlu1 %6417  ;;  %7108 = vmatmul.mubr.msk.f32.vlgmr.msra.gmra.mrb[2].mxu1 %vm294_vm3, %v7096_v57 }
 0x165   : > { %v6435_v28 = vsel %vm1756_vm7, %v6418_v46, %v6420_v39  ;;  %7112 = vmatprep.subr.msk.mxu1 %vm619_vm4, %v6438_v26  ;;  %6597 = vmatprep.mubr.f32.mxu1 %v7938_v0 }
 0x166   : > { %7110 = vmatpush1.msk.msra.mxu0 %vm619_vm4, %v6435_v28  ;;  %7113 = vmatpush1.msk.msra.mxu1 %vm619_vm4, %v6437_v35 }
 0x167   : > { %7111 = vmatmul.mubr.msk.f32.vlgmr.msra.gmra.mrb[0].mxu0 %vm615_vm5, %v7095_v34  ;;  %v6428_v33 = vpop.permute.xlu0 %6427 }
 0x168   : > { %v6439_v29 = vsel %vm1756_vm7, %v6426_v24, %v6428_v33  ;;  %v6430_v44 = vpop.permute.xlu1 %6429  ;;  %7114 = vmatmul.mubr.msk.f32.vlgmr.msra.gmra.mrb[0].mxu1 %vm615_vm5, %v7095_v34  ;;  %6668 = vmatprep.mubr.f32.mxu0 %v7938_v0 }
 0x169   : > { %v6440_v36 = vsel %vm1756_vm7, %v6428_v33, %v6430_v44  ;;  %6739 = vmatprep.mubr.f32.mxu1 %v7938_v0 }
 0x16a   : > { %7115 = vmatprep.subr.msk.mxu0 %vm619_vm4, %v6440_v36 }
 0x16b   : > { %7116 = vmatpush1.msk.msra.mxu0 %vm619_vm4, %v6439_v29  ;;  %v6432_v23 = vpop.permute.xlu0 %6431 }
 0x16c   : > { %v6441_v37 = vsel %vm1756_vm7, %v6430_v44, %v6432_v23  ;;  %v6434_v42 = vpop.permute.xlu1 %6433  ;;  %7117 = vmatmul.mubr.msk.f32.vlgmr.msra.gmra.mrb[2].mxu0 %vm615_vm5, %v7095_v34 }
 0x16d   : > { %v6442_v54 = vsel %vm1756_vm7, %v6432_v23, %v6434_v42 }
 0x16e   : > { %7118 = vmatprep.subr.msk.mxu1 %vm619_vm4, %v6442_v54 }
 0x16f   : > { %7119 = vmatpush1.msk.msra.mxu1 %vm619_vm4, %v6441_v37 }
 0x170   : > { %7120 = vmatmul.mubr.msk.f32.vlgmr.msra.gmra.mrb[2].mxu1 %vm615_vm5, %v7095_v34 }
 0x181   : > { %v6758_v0 = vpop.permute.xlu0 %6757 }
 0x23a   : > { %v6528_v45 = vpop.f32.mrb[0].mxu0 }
 0x23b   : > { %v6760_v21 = vadd.f32 %v6758_v0, %v6528_v45  ;;  %v6530_v8 = vpop.f32.mrb[1].mxu0  ;;  %v6599_v15 = vpop.f32.mrb[0].mxu1 }
 0x23c   : > { %v6761_v47 = vadd.f32 %v6758_v0, %v6530_v8  ;;  %v6762_v48 = vadd.f32 %v6758_v0, %v6599_v15  ;;  %v6601_v53 = vpop.f32.mrb[1].mxu1 }
 0x23d   : > { %6768 = vst [vmem:[%s256_s13] sm:$0xff] %v6760_v21  ;;  %v6763_v10 = vadd.f32 %v6758_v0, %v6601_v53 }
 0x23e   : > { %6769 = vst [vmem:[%s256_s13 + $0x8] sm:$0xff] %v6761_v47  ;;  %6770 = vst [vmem:[%s256_s13 + $0x10] sm:$0xff] %v6762_v48 }
 0x23f   : > { %6771 = vst [vmem:[%s256_s13 + $0x18] sm:$0xff] %v6763_v10  ;;  %v6670_v41 = vpop.f32.mrb[2].mxu0 }
 0x240   : > { %v6764_v51 = vadd.f32 %v6758_v0, %v6670_v41  ;;  %v6672_v32 = vpop.f32.mrb[3].mxu0 }
 0x241   : > { %v6765_v31 = vadd.f32 %v6758_v0, %v6672_v32 }
 0x242   : > { %6772 = vst [vmem:[%s256_s13 + $0x20] sm:$0xff] %v6764_v51 }
 0x243   : > { %6773 = vst [vmem:[%s256_s13 + $0x28] sm:$0xff] %v6765_v31  ;;  %v6741_v52 = vpop.f32.mrb[2].mxu1 }
 0x244   : > { %v6766_v55 = vadd.f32 %v6758_v0, %v6741_v52  ;;  %v6743_v5 = vpop.f32.mrb[3].mxu1 }
 0x245   : > { %v6767_v58 = vadd.f32 %v6758_v0, %v6743_v5 }
 0x246   : > { %6774 = vst [vmem:[%s256_s13 + $0x30] sm:$0xff] %v6766_v55 }
 0x247   : > { %6775 = vst [vmem:[%s256_s13 + $0x38] sm:$0xff] %v6767_v58 }
 0x248   : > { %7855 = shalt.err (!%p7852_p7)
}
 0x249   : > { %s7856_s8 = scalar_lea.hbm %s9151_s15, 1024  ;;  %s7860_s14 = scalar_lea.hbm %s9211_s5, 4096 }
 0x24a   : > { %p7857_p9 = scmp.ne.s32.totalorder %s9151_s15, %s7856_s8  ;;  %p7861_p12 = scmp.lt.u32.totalorder %s9151_s15, %s9211_s5 }
 0x24b   : > { %p7862_p13 = scmp.lt.u32.totalorder %s7860_s14, %s7856_s8  ;;  %p7864_p1 = scmp.lt.u32.totalorder %s7856_s8, %s9151_s15 }
 0x24c   : > { %p7858_p10 = pnand %p7857_p9, %p8025_p3 }
 0x24d   : > { %p7863_p0 = por %p7862_p13, %p7861_p12 }
 0x24e   : > { %p7859_p11 = pneg %p7858_p10 }
 0x24f   : > { %p7865_p2 = por %p7864_p1, %p7863_p0 }
 0x251   : > { %p7866_p4 = pnand %p7865_p2, %p7859_p11 }
 0x253   : > { %7869 = shalt.err (!%p7866_p4)
}
 0x254   : > { %7481 = dma.vmem_to_hbm [thread:$0]  (%p8025_p3), %s9153_s16, 1024, %s9151_s15, %s6777_s27  }
 0x255 PF: > { %p7487_p5 = scmp.ge.s32.totalorder %s7936_s25, 2  ;;  %s6805_s22 = sand.u32 1, %s7908_s18  }
 0x256   : > { %s6806_s17 = scalar_lea.sflag [#allocation3], %s6805_s22 }
 0x257   : > { %p7484_p6 = pnand %p7487_p5, %p8034_p8 }
 0x259   : > { %7903 = dma.done.wait (!%p7484_p6), %s6806_s17, 1024  }
 0x25a   : > { %7905 = vsyncadd (!%p7484_p6), %s6806_s17, 4294966272  ;;  %s18_s25 = sadd.s32 1, %s7936_s25   ;;  %s9216_s18 = smov %s7912_s19 }
 0x25b   : > { %p15_p7 = scmp.ge.s32.totalorder %s18_s25, 6   ;;  %s9217_s19 = smov %s7916_s20 }
 0x25c   : > { %s9218_s20 = smov %s8043_s11  ;;  %s9219_s21 = smov %s7928_s23 }
 0x25d   : > { %s9220_s22 = smov %s7932_s24  ;;  %s9221_s23 = smov %s9224_s28 }
 0x25e   : > { %s9222_s24 = smov %s9228_s29  ;;  %17 = sbr.rel (!%p15_p7) target bundleno = 5 (0x5), region = 94 }
 0x265   :  { %6811 = vsyncpa [#allocation3], 1 }
 0x266   :  { %6813 = vsyncpa [#allocation3 + $0x1], 1 }

</bundles_post_ra>
